<compile_context>
chip_gen: v7x
topology: tpu7x:2x2x1
jax: 0.10.0
libtpu: 0.0.40
codegen_flags: <defaults>
</compile_context>

<pallas_src>
import functools
import math

import jax
import jax.numpy as jnp
from jax import lax
from jax.experimental import pallas as pl
from jax.experimental.pallas import tpu as pltpu


def lstm_model_kernel(score_ref, x_ref, wx_ref, wh_ref, b_ref, wfc_ref, bfc_ref,
                      out_ref, *, S, B, H):
    G = 8 * H  # fused gate width for both cells: [i1 i2 | f1 f2 | g1 g2 | o1 o2]

    # (1) Input projections for ALL timesteps of BOTH cells in one matmul.
    #     x_ref: (S*B, D1+D2); wx_ref: (D1+D2, 8H) block-structured; b folded in.
    xproj = (jnp.dot(x_ref[...], wx_ref[...], preferred_element_type=jnp.float32)
             + b_ref[...])                                    # (S*B, 8H)

    wh = wh_ref[...]                                          # (2H, 8H) block-diag

    # tanh on the cell-gate block (lanes [4H, 6H)); sigmoid everywhere else.
    lane = lax.broadcasted_iota(jnp.int32, (B, G), 1)
    g_mask = (lane >= 4 * H) & (lane < 6 * H)

    h = jnp.zeros((B, 2 * H), jnp.float32)   # [h1 | h2]
    c = jnp.zeros((B, 2 * H), jnp.float32)   # [c1 | c2]
    h_rows = []

    # (2) Fully unrolled serial recurrence: one (B,2H)@(2H,8H) MXU pass per step
    #     produces both cells' gates.
    for t in range(S):
        if t == 0:
            own = jnp.float32(0.5)     # weight = 1 -> 1/(1+1) = w/(1+w) = 0.5
            other = jnp.float32(0.5)
        else:
            w = jnp.float32(2.0) * score_ref[t - 1]
            own = jnp.float32(1.0) / (jnp.float32(1.0) + w)
            other = w / (jnp.float32(1.0) + w)

        c_swap = jnp.concatenate([c[:, H:], c[:, :H]], axis=-1)   # [c2 | c1]
        cmix = c * own + c_swap * other                           # [cmix1 | cmix2]

        gates = (xproj[t * B:(t + 1) * B, :]
                 + jnp.dot(h, wh, preferred_element_type=jnp.float32))  # (B, 8H)
        act = jnp.where(g_mask, jnp.tanh(gates), jax.nn.sigmoid(gates))

        i = act[:, 0 * H:2 * H]
        f = act[:, 2 * H:4 * H]
        g = act[:, 4 * H:6 * H]
        o = act[:, 6 * H:8 * H]

        c = cmix * f + i * g
        h = o * jnp.tanh(c)
        h_rows.append(h[0:1, :])     # row 0 of both cells, (1, 2H)

    # (3) Epilogue: outs[t] = h1[0] + h2[0]; fc2 folded into fc1 on the host and
    #     the cell-sum folded into the matmul via the doubled weight wfc.
    h_cat = jnp.concatenate(h_rows, axis=0)                       # (S, 2H)
    out_ref[...] = jax.nn.sigmoid(
        jnp.dot(h_cat, wfc_ref[...], preferred_element_type=jnp.float32)
        + bfc_ref[...])


def _fuse_params(params, D1, D2, H):
    """Host-side weight fusion / column reordering (one-time cost)."""
    G = 8 * H
    wx_fused = jnp.zeros((D1 + D2, G), jnp.float32)
    wh_fused = jnp.zeros((2 * H, G), jnp.float32)
    b_fused = jnp.zeros((1, G), jnp.float32)
    for k in range(4):  # gate order in the original weights: i, f, g, o
        src = slice(k * H, (k + 1) * H)
        dst1 = slice(2 * k * H, 2 * k * H + H)          # cell-1 half of gate k
        dst2 = slice(2 * k * H + H, 2 * (k + 1) * H)    # cell-2 half of gate k
        wx_fused = wx_fused.at[:D1, dst1].set(params['wx1'][:, src])
        wx_fused = wx_fused.at[D1:, dst2].set(params['wx2'][:, src])
        wh_fused = wh_fused.at[:H, dst1].set(params['wh1'][:, src])
        wh_fused = wh_fused.at[H:, dst2].set(params['wh2'][:, src])
        b_fused = b_fused.at[:, dst1].set(params['b1'][:, src])
        b_fused = b_fused.at[:, dst2].set(params['b2'][:, src])
    # fc2 folded into fc1 (exact algebra); doubled so [h1|h2] @ wfc == (h1+h2)@Wc
    wc = params['wf1'] @ params['wf2']                         # (H, O)
    wfc = jnp.concatenate([wc, wc], axis=0)                    # (2H, O)
    bfc = params['bf1'] @ params['wf2'] + params['bf2']        # (1, O)
    return wx_fused, wh_fused, b_fused, wfc, bfc


def lstm_model_forward(x1, x2, score, params):
    S, B, D1 = x1.shape
    S2, B2, D2 = x2.shape
    assert (S2, B2) == (S, B)
    assert B == S, "PyTorch model implicitly requires x1.size(0) == recurrent batch"
    H = params['wh1'].shape[0]
    O = params['wf2'].shape[1]

    wx_f, wh_f, b_f, wfc, bfc = _fuse_params(params, D1, D2, H)
    x_cat = jnp.concatenate([x1, x2], axis=-1).reshape(S * B, D1 + D2)

    kernel = functools.partial(lstm_model_kernel, S=S, B=B, H=H)
    vmem = pl.BlockSpec(memory_space=pltpu.MemorySpace.VMEM)
    smem = pl.BlockSpec(memory_space=pltpu.MemorySpace.SMEM)

    return pl.pallas_call(
        kernel,
        out_shape=jax.ShapeDtypeStruct((S, O), jnp.float32),
        in_specs=[smem, vmem, vmem, vmem, vmem, vmem, vmem],
        out_specs=vmem,
    )(score, x_cat, wx_f, wh_f, b_f, wfc, bfc)


def init_params(key, D1, D2, H, HH, O):
    ks = jax.random.split(key, 12)
    std = 1.0 / math.sqrt(H)

    def u(k, shape, s):
        return jax.random.uniform(k, shape, jnp.float32, -s, s)

    # LSTM cell 1 (x2h + h2h, biases folded together)
    wx1 = u(ks[0], (D1, 4 * H), std)
    wh1 = u(ks[1], (H, 4 * H), std)
    b1 = (u(ks[2], (4 * H,), std) + u(ks[3], (4 * H,), std)).reshape(1, 4 * H)
    # LSTM cell 2
    wx2 = u(ks[4], (D2, 4 * H), std)
    wh2 = u(ks[5], (H, 4 * H), std)
    b2 = (u(ks[6], (4 * H,), std) + u(ks[7], (4 * H,), std)).reshape(1, 4 * H)
    # fc1 / fc2 (PyTorch default Linear init: U(-1/sqrt(fan_in), 1/sqrt(fan_in)))
    s1 = 1.0 / math.sqrt(H)
    wf1 = u(ks[8], (H, HH), s1)
    bf1 = u(ks[9], (1, HH), s1)
    s2 = 1.0 / math.sqrt(HH)
    wf2 = u(ks[10], (HH, O), s2)
    bf2 = u(ks[11], (1, O), s2)
    return dict(wx1=wx1, wh1=wh1, b1=b1, wx2=wx2, wh2=wh2, b2=b2,
                wf1=wf1, bf1=bf1, wf2=wf2, bf2=bf2)


def reference_forward(x1, x2, score, params):
    """Pure-JAX reference mirroring the PyTorch forward exactly."""
    S, B, _ = x1.shape
    H = params['wh1'].shape[0]
    hn1 = jnp.zeros((B, H), jnp.float32)
    cn1 = jnp.zeros((B, H), jnp.float32)
    hn2 = jnp.zeros((B, H), jnp.float32)
    cn2 = jnp.zeros((B, H), jnp.float32)

    def cell(x, h, c, wx, wh, b):
        g = x @ wx + h @ wh + b
        i = jax.nn.sigmoid(g[:, :H])
        f = jax.nn.sigmoid(g[:, H:2 * H])
        gg = jnp.tanh(g[:, 2 * H:3 * H])
        o = jax.nn.sigmoid(g[:, 3 * H:])
        cn = c * f + i * gg
        return o * jnp.tanh(cn), cn

    outs = []
    for seq in range(S):
        w = jnp.float32(1.0) if seq == 0 else 2.0 * score[seq - 1]
        cm1 = cn1 * (1.0 / (1.0 + w)) + cn2 * (w / (1.0 + w))
        cm2 = cn2 * (1.0 / (1.0 + w)) + cn1 * (w / (1.0 + w))
        hn1, cn1 = cell(x1[seq], hn1, cm1, params['wx1'], params['wh1'], params['b1'])
        hn2, cn2 = cell(x2[seq], hn2, cm2, params['wx2'], params['wh2'], params['b2'])
        outs.append(hn1[0] + hn2[0])
    o = jnp.stack(outs)
    o1 = o @ params['wf1'] + params['bf1']
    o2 = o1 @ params['wf2'] + params['bf2']
    return jax.nn.sigmoid(o2)


if __name__ == "__main__":
    S = 8          # sequence length == recurrent batch (the PyTorch code requires this)
    D1, D2 = 16, 12
    H, HH, O = 32, 16, 4

    key = jax.random.PRNGKey(0)
    kp, kx1, kx2, ksc = jax.random.split(key, 4)
    params = init_params(kp, D1, D2, H, HH, O)
    x1 = jax.random.normal(kx1, (S, S, D1), jnp.float32)
    x2 = jax.random.normal(kx2, (S, S, D2), jnp.float32)
    score = jax.random.uniform(ksc, (S,), jnp.float32)

    out = jax.block_until_ready(lstm_model_forward(x1, x2, score, params))
    ref = reference_forward(x1, x2, score, params)

    assert out.shape == (S, O)
    if not jnp.allclose(out, ref, atol=2e-3, rtol=2e-3):
        raise AssertionError("Pallas kernel output mismatches JAX reference")
    print("KERNEL_OK")
</pallas_src>

<mosaic_0001>
module attributes {stable_mosaic.version = 11 : i64} {
  func.func @lstm_model_kernel(%arg0: memref<8xf32, #tpu.memory_space<smem>>, %arg1: memref<64x28xf32, #tpu.memory_space<vmem>>, %arg2: memref<28x256xf32, #tpu.memory_space<vmem>>, %arg3: memref<64x256xf32, #tpu.memory_space<vmem>>, %arg4: memref<1x256xf32, #tpu.memory_space<vmem>>, %arg5: memref<64x4xf32, #tpu.memory_space<vmem>>, %arg6: memref<1x4xf32, #tpu.memory_space<vmem>>, %arg7: memref<8x4xf32, #tpu.memory_space<vmem>>) attributes {dimension_semantics = [], scalar_prefetch = 0 : i64, scratch_operands = 0 : i64, tpu.core_type = #tpu.core_type<tc>} {
    %c0 = arith.constant 0 : index
    %c0_0 = arith.constant 0 : index
    %0 = vector.load %arg1[%c0, %c0_0] : memref<64x28xf32, #tpu.memory_space<vmem>>, vector<64x28xf32>
    %c0_1 = arith.constant 0 : index
    %c0_2 = arith.constant 0 : index
    %1 = vector.load %arg2[%c0_1, %c0_2] : memref<28x256xf32, #tpu.memory_space<vmem>>, vector<28x256xf32>
    %cst = arith.constant dense<0.000000e+00> : vector<64x256xf32>
    %2 = tpu.matmul %0, %1, %cst {dimension_numbers = #tpu.dot_dimension_numbers<[1], [0], [0], [1], [0, 0, 1, 1], [], []>} : vector<64x28xf32>, vector<28x256xf32>, vector<64x256xf32> -> vector<64x256xf32>
    %c0_3 = arith.constant 0 : index
    %c0_4 = arith.constant 0 : index
    %3 = vector.load %arg4[%c0_3, %c0_4] : memref<1x256xf32, #tpu.memory_space<vmem>>, vector<1x256xf32>
    %4 = vector.broadcast %3 : vector<1x256xf32> to vector<64x256xf32>
    %5 = arith.addf %2, %4 : vector<64x256xf32>
    %c0_5 = arith.constant 0 : index
    %c0_6 = arith.constant 0 : index
    %6 = vector.load %arg3[%c0_5, %c0_6] : memref<64x256xf32, #tpu.memory_space<vmem>>, vector<64x256xf32>
    %7 = tpu.iota {dimensions = array<i32: 1>} : vector<8x256xi32>
    %c128_i32 = arith.constant 128 : i32
    %8 = vector.broadcast %c128_i32 : i32 to vector<8x256xi32>
    %9 = arith.cmpi sge, %7, %8 : vector<8x256xi32>
    %c192_i32 = arith.constant 192 : i32
    %10 = vector.broadcast %c192_i32 : i32 to vector<8x256xi32>
    %11 = arith.cmpi slt, %7, %10 : vector<8x256xi32>
    %12 = arith.andi %9, %11 : vector<8x256xi1>
    %cst_7 = arith.constant 0.000000e+00 : f32
    %13 = vector.broadcast %cst_7 : f32 to vector<8x64xf32>
    %cst_8 = arith.constant 0.000000e+00 : f32
    %14 = vector.broadcast %cst_8 : f32 to vector<8x64xf32>
    %15 = vector.extract_strided_slice %14 {offsets = [0, 32], sizes = [8, 32], strides = [1, 1]} : vector<8x64xf32> to vector<8x32xf32>
    %16 = vector.extract_strided_slice %14 {offsets = [0, 0], sizes = [8, 32], strides = [1, 1]} : vector<8x64xf32> to vector<8x32xf32>
    %17 = tpu.concatenate %15, %16 in 1 : vector<8x32xf32>, vector<8x32xf32> -> vector<8x64xf32>
    %cst_9 = arith.constant 5.000000e-01 : f32
    %18 = vector.broadcast %cst_9 : f32 to vector<8x64xf32>
    %19 = arith.mulf %14, %18 : vector<8x64xf32>
    %cst_10 = arith.constant 5.000000e-01 : f32
    %20 = vector.broadcast %cst_10 : f32 to vector<8x64xf32>
    %21 = arith.mulf %17, %20 : vector<8x64xf32>
    %22 = arith.addf %19, %21 : vector<8x64xf32>
    %23 = vector.extract_strided_slice %5 {offsets = [0, 0], sizes = [8, 256], strides = [1, 1]} : vector<64x256xf32> to vector<8x256xf32>
    %cst_11 = arith.constant dense<0.000000e+00> : vector<8x256xf32>
    %24 = tpu.matmul %13, %6, %cst_11 {dimension_numbers = #tpu.dot_dimension_numbers<[1], [0], [0], [1], [0, 0, 1, 1], [], []>} : vector<8x64xf32>, vector<64x256xf32>, vector<8x256xf32> -> vector<8x256xf32>
    %25 = arith.addf %23, %24 : vector<8x256xf32>
    %26 = math.tanh %25 : vector<8x256xf32>
    %27 = arith.negf %25 : vector<8x256xf32>
    %28 = math.exp %27 : vector<8x256xf32>
    %cst_12 = arith.constant 1.000000e+00 : f32
    %29 = vector.broadcast %cst_12 : f32 to vector<8x256xf32>
    %30 = arith.addf %29, %28 : vector<8x256xf32>
    %31 = arith.divf %29, %30 : vector<8x256xf32>
    %32 = arith.select %12, %26, %31 : vector<8x256xi1>, vector<8x256xf32>
    %33 = vector.extract_strided_slice %32 {offsets = [0, 0], sizes = [8, 64], strides = [1, 1]} : vector<8x256xf32> to vector<8x64xf32>
    %34 = vector.extract_strided_slice %32 {offsets = [0, 64], sizes = [8, 64], strides = [1, 1]} : vector<8x256xf32> to vector<8x64xf32>
    %35 = vector.extract_strided_slice %32 {offsets = [0, 128], sizes = [8, 64], strides = [1, 1]} : vector<8x256xf32> to vector<8x64xf32>
    %36 = vector.extract_strided_slice %32 {offsets = [0, 192], sizes = [8, 64], strides = [1, 1]} : vector<8x256xf32> to vector<8x64xf32>
    %37 = arith.mulf %22, %34 : vector<8x64xf32>
    %38 = arith.mulf %33, %35 : vector<8x64xf32>
    %39 = arith.addf %37, %38 : vector<8x64xf32>
    %40 = math.tanh %39 : vector<8x64xf32>
    %41 = arith.mulf %36, %40 : vector<8x64xf32>
    %42 = vector.extract_strided_slice %41 {offsets = [0, 0], sizes = [1, 64], strides = [1, 1]} : vector<8x64xf32> to vector<1x64xf32>
    %c0_13 = arith.constant 0 : index
    %43 = memref.load %arg0[%c0_13] : memref<8xf32, #tpu.memory_space<smem>>
    %cst_14 = arith.constant 2.000000e+00 : f32
    %44 = arith.mulf %cst_14, %43 : f32
    %cst_15 = arith.constant 1.000000e+00 : f32
    %45 = arith.addf %cst_15, %44 : f32
    %cst_16 = arith.constant 1.000000e+00 : f32
    %46 = arith.divf %cst_16, %45 : f32
    %cst_17 = arith.constant 1.000000e+00 : f32
    %47 = arith.addf %cst_17, %44 : f32
    %48 = arith.divf %44, %47 : f32
    %49 = vector.extract_strided_slice %39 {offsets = [0, 32], sizes = [8, 32], strides = [1, 1]} : vector<8x64xf32> to vector<8x32xf32>
    %50 = vector.extract_strided_slice %39 {offsets = [0, 0], sizes = [8, 32], strides = [1, 1]} : vector<8x64xf32> to vector<8x32xf32>
    %51 = tpu.concatenate %49, %50 in 1 : vector<8x32xf32>, vector<8x32xf32> -> vector<8x64xf32>
    %52 = vector.broadcast %46 : f32 to vector<8x64xf32>
    %53 = arith.mulf %39, %52 : vector<8x64xf32>
    %54 = vector.broadcast %48 : f32 to vector<8x64xf32>
    %55 = arith.mulf %51, %54 : vector<8x64xf32>
    %56 = arith.addf %53, %55 : vector<8x64xf32>
    %57 = vector.extract_strided_slice %5 {offsets = [8, 0], sizes = [8, 256], strides = [1, 1]} : vector<64x256xf32> to vector<8x256xf32>
    %cst_18 = arith.constant dense<0.000000e+00> : vector<8x256xf32>
    %58 = tpu.matmul %41, %6, %cst_18 {dimension_numbers = #tpu.dot_dimension_numbers<[1], [0], [0], [1], [0, 0, 1, 1], [], []>} : vector<8x64xf32>, vector<64x256xf32>, vector<8x256xf32> -> vector<8x256xf32>
    %59 = arith.addf %57, %58 : vector<8x256xf32>
    %60 = math.tanh %59 : vector<8x256xf32>
    %61 = arith.negf %59 : vector<8x256xf32>
    %62 = math.exp %61 : vector<8x256xf32>
    %cst_19 = arith.constant 1.000000e+00 : f32
    %63 = vector.broadcast %cst_19 : f32 to vector<8x256xf32>
    %64 = arith.addf %63, %62 : vector<8x256xf32>
    %65 = arith.divf %63, %64 : vector<8x256xf32>
    %66 = arith.select %12, %60, %65 : vector<8x256xi1>, vector<8x256xf32>
    %67 = vector.extract_strided_slice %66 {offsets = [0, 0], sizes = [8, 64], strides = [1, 1]} : vector<8x256xf32> to vector<8x64xf32>
    %68 = vector.extract_strided_slice %66 {offsets = [0, 64], sizes = [8, 64], strides = [1, 1]} : vector<8x256xf32> to vector<8x64xf32>
    %69 = vector.extract_strided_slice %66 {offsets = [0, 128], sizes = [8, 64], strides = [1, 1]} : vector<8x256xf32> to vector<8x64xf32>
    %70 = vector.extract_strided_slice %66 {offsets = [0, 192], sizes = [8, 64], strides = [1, 1]} : vector<8x256xf32> to vector<8x64xf32>
    %71 = arith.mulf %56, %68 : vector<8x64xf32>
    %72 = arith.mulf %67, %69 : vector<8x64xf32>
    %73 = arith.addf %71, %72 : vector<8x64xf32>
    %74 = math.tanh %73 : vector<8x64xf32>
    %75 = arith.mulf %70, %74 : vector<8x64xf32>
    %76 = vector.extract_strided_slice %75 {offsets = [0, 0], sizes = [1, 64], strides = [1, 1]} : vector<8x64xf32> to vector<1x64xf32>
    %c1 = arith.constant 1 : index
    %77 = memref.load %arg0[%c1] : memref<8xf32, #tpu.memory_space<smem>>
    %cst_20 = arith.constant 2.000000e+00 : f32
    %78 = arith.mulf %cst_20, %77 : f32
    %cst_21 = arith.constant 1.000000e+00 : f32
    %79 = arith.addf %cst_21, %78 : f32
    %cst_22 = arith.constant 1.000000e+00 : f32
    %80 = arith.divf %cst_22, %79 : f32
    %cst_23 = arith.constant 1.000000e+00 : f32
    %81 = arith.addf %cst_23, %78 : f32
    %82 = arith.divf %78, %81 : f32
    %83 = vector.extract_strided_slice %73 {offsets = [0, 32], sizes = [8, 32], strides = [1, 1]} : vector<8x64xf32> to vector<8x32xf32>
    %84 = vector.extract_strided_slice %73 {offsets = [0, 0], sizes = [8, 32], strides = [1, 1]} : vector<8x64xf32> to vector<8x32xf32>
    %85 = tpu.concatenate %83, %84 in 1 : vector<8x32xf32>, vector<8x32xf32> -> vector<8x64xf32>
    %86 = vector.broadcast %80 : f32 to vector<8x64xf32>
    %87 = arith.mulf %73, %86 : vector<8x64xf32>
    %88 = vector.broadcast %82 : f32 to vector<8x64xf32>
    %89 = arith.mulf %85, %88 : vector<8x64xf32>
    %90 = arith.addf %87, %89 : vector<8x64xf32>
    %91 = vector.extract_strided_slice %5 {offsets = [16, 0], sizes = [8, 256], strides = [1, 1]} : vector<64x256xf32> to vector<8x256xf32>
    %cst_24 = arith.constant dense<0.000000e+00> : vector<8x256xf32>
    %92 = tpu.matmul %75, %6, %cst_24 {dimension_numbers = #tpu.dot_dimension_numbers<[1], [0], [0], [1], [0, 0, 1, 1], [], []>} : vector<8x64xf32>, vector<64x256xf32>, vector<8x256xf32> -> vector<8x256xf32>
    %93 = arith.addf %91, %92 : vector<8x256xf32>
    %94 = math.tanh %93 : vector<8x256xf32>
    %95 = arith.negf %93 : vector<8x256xf32>
    %96 = math.exp %95 : vector<8x256xf32>
    %cst_25 = arith.constant 1.000000e+00 : f32
    %97 = vector.broadcast %cst_25 : f32 to vector<8x256xf32>
    %98 = arith.addf %97, %96 : vector<8x256xf32>
    %99 = arith.divf %97, %98 : vector<8x256xf32>
    %100 = arith.select %12, %94, %99 : vector<8x256xi1>, vector<8x256xf32>
    %101 = vector.extract_strided_slice %100 {offsets = [0, 0], sizes = [8, 64], strides = [1, 1]} : vector<8x256xf32> to vector<8x64xf32>
    %102 = vector.extract_strided_slice %100 {offsets = [0, 64], sizes = [8, 64], strides = [1, 1]} : vector<8x256xf32> to vector<8x64xf32>
    %103 = vector.extract_strided_slice %100 {offsets = [0, 128], sizes = [8, 64], strides = [1, 1]} : vector<8x256xf32> to vector<8x64xf32>
    %104 = vector.extract_strided_slice %100 {offsets = [0, 192], sizes = [8, 64], strides = [1, 1]} : vector<8x256xf32> to vector<8x64xf32>
    %105 = arith.mulf %90, %102 : vector<8x64xf32>
    %106 = arith.mulf %101, %103 : vector<8x64xf32>
    %107 = arith.addf %105, %106 : vector<8x64xf32>
    %108 = math.tanh %107 : vector<8x64xf32>
    %109 = arith.mulf %104, %108 : vector<8x64xf32>
    %110 = vector.extract_strided_slice %109 {offsets = [0, 0], sizes = [1, 64], strides = [1, 1]} : vector<8x64xf32> to vector<1x64xf32>
    %c2 = arith.constant 2 : index
    %111 = memref.load %arg0[%c2] : memref<8xf32, #tpu.memory_space<smem>>
    %cst_26 = arith.constant 2.000000e+00 : f32
    %112 = arith.mulf %cst_26, %111 : f32
    %cst_27 = arith.constant 1.000000e+00 : f32
    %113 = arith.addf %cst_27, %112 : f32
    %cst_28 = arith.constant 1.000000e+00 : f32
    %114 = arith.divf %cst_28, %113 : f32
    %cst_29 = arith.constant 1.000000e+00 : f32
    %115 = arith.addf %cst_29, %112 : f32
    %116 = arith.divf %112, %115 : f32
    %117 = vector.extract_strided_slice %107 {offsets = [0, 32], sizes = [8, 32], strides = [1, 1]} : vector<8x64xf32> to vector<8x32xf32>
    %118 = vector.extract_strided_slice %107 {offsets = [0, 0], sizes = [8, 32], strides = [1, 1]} : vector<8x64xf32> to vector<8x32xf32>
    %119 = tpu.concatenate %117, %118 in 1 : vector<8x32xf32>, vector<8x32xf32> -> vector<8x64xf32>
    %120 = vector.broadcast %114 : f32 to vector<8x64xf32>
    %121 = arith.mulf %107, %120 : vector<8x64xf32>
    %122 = vector.broadcast %116 : f32 to vector<8x64xf32>
    %123 = arith.mulf %119, %122 : vector<8x64xf32>
    %124 = arith.addf %121, %123 : vector<8x64xf32>
    %125 = vector.extract_strided_slice %5 {offsets = [24, 0], sizes = [8, 256], strides = [1, 1]} : vector<64x256xf32> to vector<8x256xf32>
    %cst_30 = arith.constant dense<0.000000e+00> : vector<8x256xf32>
    %126 = tpu.matmul %109, %6, %cst_30 {dimension_numbers = #tpu.dot_dimension_numbers<[1], [0], [0], [1], [0, 0, 1, 1], [], []>} : vector<8x64xf32>, vector<64x256xf32>, vector<8x256xf32> -> vector<8x256xf32>
    %127 = arith.addf %125, %126 : vector<8x256xf32>
    %128 = math.tanh %127 : vector<8x256xf32>
    %129 = arith.negf %127 : vector<8x256xf32>
    %130 = math.exp %129 : vector<8x256xf32>
    %cst_31 = arith.constant 1.000000e+00 : f32
    %131 = vector.broadcast %cst_31 : f32 to vector<8x256xf32>
    %132 = arith.addf %131, %130 : vector<8x256xf32>
    %133 = arith.divf %131, %132 : vector<8x256xf32>
    %134 = arith.select %12, %128, %133 : vector<8x256xi1>, vector<8x256xf32>
    %135 = vector.extract_strided_slice %134 {offsets = [0, 0], sizes = [8, 64], strides = [1, 1]} : vector<8x256xf32> to vector<8x64xf32>
    %136 = vector.extract_strided_slice %134 {offsets = [0, 64], sizes = [8, 64], strides = [1, 1]} : vector<8x256xf32> to vector<8x64xf32>
    %137 = vector.extract_strided_slice %134 {offsets = [0, 128], sizes = [8, 64], strides = [1, 1]} : vector<8x256xf32> to vector<8x64xf32>
    %138 = vector.extract_strided_slice %134 {offsets = [0, 192], sizes = [8, 64], strides = [1, 1]} : vector<8x256xf32> to vector<8x64xf32>
    %139 = arith.mulf %124, %136 : vector<8x64xf32>
    %140 = arith.mulf %135, %137 : vector<8x64xf32>
    %141 = arith.addf %139, %140 : vector<8x64xf32>
    %142 = math.tanh %141 : vector<8x64xf32>
    %143 = arith.mulf %138, %142 : vector<8x64xf32>
    %144 = vector.extract_strided_slice %143 {offsets = [0, 0], sizes = [1, 64], strides = [1, 1]} : vector<8x64xf32> to vector<1x64xf32>
    %c3 = arith.constant 3 : index
    %145 = memref.load %arg0[%c3] : memref<8xf32, #tpu.memory_space<smem>>
    %cst_32 = arith.constant 2.000000e+00 : f32
    %146 = arith.mulf %cst_32, %145 : f32
    %cst_33 = arith.constant 1.000000e+00 : f32
    %147 = arith.addf %cst_33, %146 : f32
    %cst_34 = arith.constant 1.000000e+00 : f32
    %148 = arith.divf %cst_34, %147 : f32
    %cst_35 = arith.constant 1.000000e+00 : f32
    %149 = arith.addf %cst_35, %146 : f32
    %150 = arith.divf %146, %149 : f32
    %151 = vector.extract_strided_slice %141 {offsets = [0, 32], sizes = [8, 32], strides = [1, 1]} : vector<8x64xf32> to vector<8x32xf32>
    %152 = vector.extract_strided_slice %141 {offsets = [0, 0], sizes = [8, 32], strides = [1, 1]} : vector<8x64xf32> to vector<8x32xf32>
    %153 = tpu.concatenate %151, %152 in 1 : vector<8x32xf32>, vector<8x32xf32> -> vector<8x64xf32>
    %154 = vector.broadcast %148 : f32 to vector<8x64xf32>
    %155 = arith.mulf %141, %154 : vector<8x64xf32>
    %156 = vector.broadcast %150 : f32 to vector<8x64xf32>
    %157 = arith.mulf %153, %156 : vector<8x64xf32>
    %158 = arith.addf %155, %157 : vector<8x64xf32>
    %159 = vector.extract_strided_slice %5 {offsets = [32, 0], sizes = [8, 256], strides = [1, 1]} : vector<64x256xf32> to vector<8x256xf32>
    %cst_36 = arith.constant dense<0.000000e+00> : vector<8x256xf32>
    %160 = tpu.matmul %143, %6, %cst_36 {dimension_numbers = #tpu.dot_dimension_numbers<[1], [0], [0], [1], [0, 0, 1, 1], [], []>} : vector<8x64xf32>, vector<64x256xf32>, vector<8x256xf32> -> vector<8x256xf32>
    %161 = arith.addf %159, %160 : vector<8x256xf32>
    %162 = math.tanh %161 : vector<8x256xf32>
    %163 = arith.negf %161 : vector<8x256xf32>
    %164 = math.exp %163 : vector<8x256xf32>
    %cst_37 = arith.constant 1.000000e+00 : f32
    %165 = vector.broadcast %cst_37 : f32 to vector<8x256xf32>
    %166 = arith.addf %165, %164 : vector<8x256xf32>
    %167 = arith.divf %165, %166 : vector<8x256xf32>
    %168 = arith.select %12, %162, %167 : vector<8x256xi1>, vector<8x256xf32>
    %169 = vector.extract_strided_slice %168 {offsets = [0, 0], sizes = [8, 64], strides = [1, 1]} : vector<8x256xf32> to vector<8x64xf32>
    %170 = vector.extract_strided_slice %168 {offsets = [0, 64], sizes = [8, 64], strides = [1, 1]} : vector<8x256xf32> to vector<8x64xf32>
    %171 = vector.extract_strided_slice %168 {offsets = [0, 128], sizes = [8, 64], strides = [1, 1]} : vector<8x256xf32> to vector<8x64xf32>
    %172 = vector.extract_strided_slice %168 {offsets = [0, 192], sizes = [8, 64], strides = [1, 1]} : vector<8x256xf32> to vector<8x64xf32>
    %173 = arith.mulf %158, %170 : vector<8x64xf32>
    %174 = arith.mulf %169, %171 : vector<8x64xf32>
    %175 = arith.addf %173, %174 : vector<8x64xf32>
    %176 = math.tanh %175 : vector<8x64xf32>
    %177 = arith.mulf %172, %176 : vector<8x64xf32>
    %178 = vector.extract_strided_slice %177 {offsets = [0, 0], sizes = [1, 64], strides = [1, 1]} : vector<8x64xf32> to vector<1x64xf32>
    %c4 = arith.constant 4 : index
    %179 = memref.load %arg0[%c4] : memref<8xf32, #tpu.memory_space<smem>>
    %cst_38 = arith.constant 2.000000e+00 : f32
    %180 = arith.mulf %cst_38, %179 : f32
    %cst_39 = arith.constant 1.000000e+00 : f32
    %181 = arith.addf %cst_39, %180 : f32
    %cst_40 = arith.constant 1.000000e+00 : f32
    %182 = arith.divf %cst_40, %181 : f32
    %cst_41 = arith.constant 1.000000e+00 : f32
    %183 = arith.addf %cst_41, %180 : f32
    %184 = arith.divf %180, %183 : f32
    %185 = vector.extract_strided_slice %175 {offsets = [0, 32], sizes = [8, 32], strides = [1, 1]} : vector<8x64xf32> to vector<8x32xf32>
    %186 = vector.extract_strided_slice %175 {offsets = [0, 0], sizes = [8, 32], strides = [1, 1]} : vector<8x64xf32> to vector<8x32xf32>
    %187 = tpu.concatenate %185, %186 in 1 : vector<8x32xf32>, vector<8x32xf32> -> vector<8x64xf32>
    %188 = vector.broadcast %182 : f32 to vector<8x64xf32>
    %189 = arith.mulf %175, %188 : vector<8x64xf32>
    %190 = vector.broadcast %184 : f32 to vector<8x64xf32>
    %191 = arith.mulf %187, %190 : vector<8x64xf32>
    %192 = arith.addf %189, %191 : vector<8x64xf32>
    %193 = vector.extract_strided_slice %5 {offsets = [40, 0], sizes = [8, 256], strides = [1, 1]} : vector<64x256xf32> to vector<8x256xf32>
    %cst_42 = arith.constant dense<0.000000e+00> : vector<8x256xf32>
    %194 = tpu.matmul %177, %6, %cst_42 {dimension_numbers = #tpu.dot_dimension_numbers<[1], [0], [0], [1], [0, 0, 1, 1], [], []>} : vector<8x64xf32>, vector<64x256xf32>, vector<8x256xf32> -> vector<8x256xf32>
    %195 = arith.addf %193, %194 : vector<8x256xf32>
    %196 = math.tanh %195 : vector<8x256xf32>
    %197 = arith.negf %195 : vector<8x256xf32>
    %198 = math.exp %197 : vector<8x256xf32>
    %cst_43 = arith.constant 1.000000e+00 : f32
    %199 = vector.broadcast %cst_43 : f32 to vector<8x256xf32>
    %200 = arith.addf %199, %198 : vector<8x256xf32>
    %201 = arith.divf %199, %200 : vector<8x256xf32>
    %202 = arith.select %12, %196, %201 : vector<8x256xi1>, vector<8x256xf32>
    %203 = vector.extract_strided_slice %202 {offsets = [0, 0], sizes = [8, 64], strides = [1, 1]} : vector<8x256xf32> to vector<8x64xf32>
    %204 = vector.extract_strided_slice %202 {offsets = [0, 64], sizes = [8, 64], strides = [1, 1]} : vector<8x256xf32> to vector<8x64xf32>
    %205 = vector.extract_strided_slice %202 {offsets = [0, 128], sizes = [8, 64], strides = [1, 1]} : vector<8x256xf32> to vector<8x64xf32>
    %206 = vector.extract_strided_slice %202 {offsets = [0, 192], sizes = [8, 64], strides = [1, 1]} : vector<8x256xf32> to vector<8x64xf32>
    %207 = arith.mulf %192, %204 : vector<8x64xf32>
    %208 = arith.mulf %203, %205 : vector<8x64xf32>
    %209 = arith.addf %207, %208 : vector<8x64xf32>
    %210 = math.tanh %209 : vector<8x64xf32>
    %211 = arith.mulf %206, %210 : vector<8x64xf32>
    %212 = vector.extract_strided_slice %211 {offsets = [0, 0], sizes = [1, 64], strides = [1, 1]} : vector<8x64xf32> to vector<1x64xf32>
    %c5 = arith.constant 5 : index
    %213 = memref.load %arg0[%c5] : memref<8xf32, #tpu.memory_space<smem>>
    %cst_44 = arith.constant 2.000000e+00 : f32
    %214 = arith.mulf %cst_44, %213 : f32
    %cst_45 = arith.constant 1.000000e+00 : f32
    %215 = arith.addf %cst_45, %214 : f32
    %cst_46 = arith.constant 1.000000e+00 : f32
    %216 = arith.divf %cst_46, %215 : f32
    %cst_47 = arith.constant 1.000000e+00 : f32
    %217 = arith.addf %cst_47, %214 : f32
    %218 = arith.divf %214, %217 : f32
    %219 = vector.extract_strided_slice %209 {offsets = [0, 32], sizes = [8, 32], strides = [1, 1]} : vector<8x64xf32> to vector<8x32xf32>
    %220 = vector.extract_strided_slice %209 {offsets = [0, 0], sizes = [8, 32], strides = [1, 1]} : vector<8x64xf32> to vector<8x32xf32>
    %221 = tpu.concatenate %219, %220 in 1 : vector<8x32xf32>, vector<8x32xf32> -> vector<8x64xf32>
    %222 = vector.broadcast %216 : f32 to vector<8x64xf32>
    %223 = arith.mulf %209, %222 : vector<8x64xf32>
    %224 = vector.broadcast %218 : f32 to vector<8x64xf32>
    %225 = arith.mulf %221, %224 : vector<8x64xf32>
    %226 = arith.addf %223, %225 : vector<8x64xf32>
    %227 = vector.extract_strided_slice %5 {offsets = [48, 0], sizes = [8, 256], strides = [1, 1]} : vector<64x256xf32> to vector<8x256xf32>
    %cst_48 = arith.constant dense<0.000000e+00> : vector<8x256xf32>
    %228 = tpu.matmul %211, %6, %cst_48 {dimension_numbers = #tpu.dot_dimension_numbers<[1], [0], [0], [1], [0, 0, 1, 1], [], []>} : vector<8x64xf32>, vector<64x256xf32>, vector<8x256xf32> -> vector<8x256xf32>
    %229 = arith.addf %227, %228 : vector<8x256xf32>
    %230 = math.tanh %229 : vector<8x256xf32>
    %231 = arith.negf %229 : vector<8x256xf32>
    %232 = math.exp %231 : vector<8x256xf32>
    %cst_49 = arith.constant 1.000000e+00 : f32
    %233 = vector.broadcast %cst_49 : f32 to vector<8x256xf32>
    %234 = arith.addf %233, %232 : vector<8x256xf32>
    %235 = arith.divf %233, %234 : vector<8x256xf32>
    %236 = arith.select %12, %230, %235 : vector<8x256xi1>, vector<8x256xf32>
    %237 = vector.extract_strided_slice %236 {offsets = [0, 0], sizes = [8, 64], strides = [1, 1]} : vector<8x256xf32> to vector<8x64xf32>
    %238 = vector.extract_strided_slice %236 {offsets = [0, 64], sizes = [8, 64], strides = [1, 1]} : vector<8x256xf32> to vector<8x64xf32>
    %239 = vector.extract_strided_slice %236 {offsets = [0, 128], sizes = [8, 64], strides = [1, 1]} : vector<8x256xf32> to vector<8x64xf32>
    %240 = vector.extract_strided_slice %236 {offsets = [0, 192], sizes = [8, 64], strides = [1, 1]} : vector<8x256xf32> to vector<8x64xf32>
    %241 = arith.mulf %226, %238 : vector<8x64xf32>
    %242 = arith.mulf %237, %239 : vector<8x64xf32>
    %243 = arith.addf %241, %242 : vector<8x64xf32>
    %244 = math.tanh %243 : vector<8x64xf32>
    %245 = arith.mulf %240, %244 : vector<8x64xf32>
    %246 = vector.extract_strided_slice %245 {offsets = [0, 0], sizes = [1, 64], strides = [1, 1]} : vector<8x64xf32> to vector<1x64xf32>
    %c6 = arith.constant 6 : index
    %247 = memref.load %arg0[%c6] : memref<8xf32, #tpu.memory_space<smem>>
    %cst_50 = arith.constant 2.000000e+00 : f32
    %248 = arith.mulf %cst_50, %247 : f32
    %cst_51 = arith.constant 1.000000e+00 : f32
    %249 = arith.addf %cst_51, %248 : f32
    %cst_52 = arith.constant 1.000000e+00 : f32
    %250 = arith.divf %cst_52, %249 : f32
    %cst_53 = arith.constant 1.000000e+00 : f32
    %251 = arith.addf %cst_53, %248 : f32
    %252 = arith.divf %248, %251 : f32
    %253 = vector.extract_strided_slice %243 {offsets = [0, 32], sizes = [8, 32], strides = [1, 1]} : vector<8x64xf32> to vector<8x32xf32>
    %254 = vector.extract_strided_slice %243 {offsets = [0, 0], sizes = [8, 32], strides = [1, 1]} : vector<8x64xf32> to vector<8x32xf32>
    %255 = tpu.concatenate %253, %254 in 1 : vector<8x32xf32>, vector<8x32xf32> -> vector<8x64xf32>
    %256 = vector.broadcast %250 : f32 to vector<8x64xf32>
    %257 = arith.mulf %243, %256 : vector<8x64xf32>
    %258 = vector.broadcast %252 : f32 to vector<8x64xf32>
    %259 = arith.mulf %255, %258 : vector<8x64xf32>
    %260 = arith.addf %257, %259 : vector<8x64xf32>
    %261 = vector.extract_strided_slice %5 {offsets = [56, 0], sizes = [8, 256], strides = [1, 1]} : vector<64x256xf32> to vector<8x256xf32>
    %cst_54 = arith.constant dense<0.000000e+00> : vector<8x256xf32>
    %262 = tpu.matmul %245, %6, %cst_54 {dimension_numbers = #tpu.dot_dimension_numbers<[1], [0], [0], [1], [0, 0, 1, 1], [], []>} : vector<8x64xf32>, vector<64x256xf32>, vector<8x256xf32> -> vector<8x256xf32>
    %263 = arith.addf %261, %262 : vector<8x256xf32>
    %264 = math.tanh %263 : vector<8x256xf32>
    %265 = arith.negf %263 : vector<8x256xf32>
    %266 = math.exp %265 : vector<8x256xf32>
    %cst_55 = arith.constant 1.000000e+00 : f32
    %267 = vector.broadcast %cst_55 : f32 to vector<8x256xf32>
    %268 = arith.addf %267, %266 : vector<8x256xf32>
    %269 = arith.divf %267, %268 : vector<8x256xf32>
    %270 = arith.select %12, %264, %269 : vector<8x256xi1>, vector<8x256xf32>
    %271 = vector.extract_strided_slice %270 {offsets = [0, 0], sizes = [8, 64], strides = [1, 1]} : vector<8x256xf32> to vector<8x64xf32>
    %272 = vector.extract_strided_slice %270 {offsets = [0, 64], sizes = [8, 64], strides = [1, 1]} : vector<8x256xf32> to vector<8x64xf32>
    %273 = vector.extract_strided_slice %270 {offsets = [0, 128], sizes = [8, 64], strides = [1, 1]} : vector<8x256xf32> to vector<8x64xf32>
    %274 = vector.extract_strided_slice %270 {offsets = [0, 192], sizes = [8, 64], strides = [1, 1]} : vector<8x256xf32> to vector<8x64xf32>
    %275 = arith.mulf %260, %272 : vector<8x64xf32>
    %276 = arith.mulf %271, %273 : vector<8x64xf32>
    %277 = arith.addf %275, %276 : vector<8x64xf32>
    %278 = math.tanh %277 : vector<8x64xf32>
    %279 = arith.mulf %274, %278 : vector<8x64xf32>
    %280 = vector.extract_strided_slice %279 {offsets = [0, 0], sizes = [1, 64], strides = [1, 1]} : vector<8x64xf32> to vector<1x64xf32>
    %281 = tpu.concatenate %42, %76, %110, %144, %178, %212, %246, %280 in 0 : vector<1x64xf32>, vector<1x64xf32>, vector<1x64xf32>, vector<1x64xf32>, vector<1x64xf32>, vector<1x64xf32>, vector<1x64xf32>, vector<1x64xf32> -> vector<8x64xf32>
    %c0_56 = arith.constant 0 : index
    %c0_57 = arith.constant 0 : index
    %282 = vector.load %arg5[%c0_56, %c0_57] : memref<64x4xf32, #tpu.memory_space<vmem>>, vector<64x4xf32>
    %cst_58 = arith.constant dense<0.000000e+00> : vector<8x4xf32>
    %283 = tpu.matmul %281, %282, %cst_58 {dimension_numbers = #tpu.dot_dimension_numbers<[1], [0], [0], [1], [0, 0, 1, 1], [], []>} : vector<8x64xf32>, vector<64x4xf32>, vector<8x4xf32> -> vector<8x4xf32>
    %c0_59 = arith.constant 0 : index
    %c0_60 = arith.constant 0 : index
    %284 = vector.load %arg6[%c0_59, %c0_60] : memref<1x4xf32, #tpu.memory_space<vmem>>, vector<1x4xf32>
    %285 = vector.broadcast %284 : vector<1x4xf32> to vector<8x4xf32>
    %286 = arith.addf %283, %285 : vector<8x4xf32>
    %287 = arith.negf %286 : vector<8x4xf32>
    %288 = math.exp %287 : vector<8x4xf32>
    %cst_61 = arith.constant 1.000000e+00 : f32
    %289 = vector.broadcast %cst_61 : f32 to vector<8x4xf32>
    %290 = arith.addf %289, %288 : vector<8x4xf32>
    %291 = arith.divf %289, %290 : vector<8x4xf32>
    %c0_62 = arith.constant 0 : index
    %c0_63 = arith.constant 0 : index
    %292 = vector.load %arg7[%c0_62, %c0_63] : memref<8x4xf32, #tpu.memory_space<vmem>>, vector<8x4xf32>
    tpu.vector_store %arg7[%c0_62, %c0_63], %291 {strides = array<i32>} : memref<8x4xf32, #tpu.memory_space<vmem>>, vector<8x4xf32>,
    return
  }
}

</mosaic_0001>

<bundles_post_ra>
// kernel: tpu_custom_call.1
= control target key start
LH: loop header
LB: loop body
LE: loop exit
PB: predicated region body
PF: predicated region fallthrough
CT: control target
= control target key end

     0   :  { %12 = vsyncpa [#allocation4], 0  ;;  %s2306_s0 = inlined_call_operand.vmem [shape: f32[8], index: 0, kind: input, shape index: {}]   ;;  %s2307_s1 = inlined_call_operand.vmem [shape: f32[64,28], index: 1, kind: input, shape index: {}]   ;;  %s2308_s2 = inlined_call_operand.hbm [shape: f32[28,256], index: 2, kind: input, shape index: {}]   ;;  %s2309_s3 = inlined_call_operand.vmem [shape: f32[64,256], index: 3, kind: input, shape index: {}]   ;;  %s2310_s4 = inlined_call_operand.vmem [shape: f32[1,256], index: 4, kind: input, shape index: {}]   ;;  %s2311_s5 = inlined_call_operand.vmem [shape: f32[64,4], index: 5, kind: input, shape index: {}]   ;;  %s2312_s6 = inlined_call_operand.vmem [shape: f32[1,4], index: 6, kind: input, shape index: {}]   ;;  %s2313_s7 = inlined_call_operand.vmem [shape: f32[8,4], index: 7, kind: output, shape index: {}]  }
   0x1   :  { %s20_s26 = sshll.u32 %s2306_s0, 4  ;;  %s21_s26 = int_to_ptr.vmem [resolvable:$true] %s20_s26 }
   0x2   :  { %13 = vsyncpa [#allocation3], 0  ;;  %s1791_s27 = scalar_lea.vmem %s21_s26, 16  ;;  %p1796_p1 = scmp.lt.s32.totalorder %s21_s26, %s21_s26 }
   0x3   :  { %p1792_p0 = scmp.ne.s32.totalorder %s21_s26, %s1791_s27  ;;  %p1797_p2 = scmp.lt.s32.totalorder %s1791_s27, %s1791_s27 }
   0x5   :  { %p1798_p3 = por %p1797_p2, %p1796_p1 }
   0x7   :  { %p1799_p4 = pnand %p1798_p3, %p1792_p0 }
   0x9   :  { %1802 = shalt.err (!%p1799_p4)
}
   0xa   :  { %s1829_s28 = smov [#allocation2]   ;;  %s1830_s29 = smov [#allocation5]  }
   0xb   :  { %23 = dma.vmem_to_smem %s21_s26, 16, %s1829_s28, [#allocation4]  }
   0xc   :  { %s31_s30 = sshll.u32 %s1830_s29, 4  ;;  %s1803_s10 = scalar_lea.hbm %s2308_s2, 1024  ;;  %s32_s30 = int_to_ptr.vmem [resolvable:$true] %s31_s30 }
   0xd   :  { %p1804_p5 = scmp.ne.s32.totalorder %s2308_s2, %s1803_s10  ;;  %p1807_p6 = scmp.lt.u32.totalorder %s1803_s10, %s2308_s2 }
   0xf   :  { %p1809_p7 = pnand %p1807_p6, %p1804_p5 }
  0x11   :  { %1812 = shalt.err (!%p1809_p7)
}
  0x12   :  { %s1813_s14 = scalar_lea.vmem %s32_s30, 1024  ;;  %p1818_p9 = scmp.lt.s32.totalorder %s32_s30, %s32_s30 }
  0x13   :  { %p1814_p8 = scmp.ne.s32.totalorder %s32_s30, %s1813_s14  ;;  %p1819_p10 = scmp.lt.s32.totalorder %s1813_s14, %s1813_s14 }
  0x15   :  { %p1820_p11 = por %p1819_p10, %p1818_p9 }
  0x17   :  { %p1821_p12 = pnand %p1820_p11, %p1814_p8 }
  0x19   :  { %1824 = shalt.err (!%p1821_p12)
}
  0x1a   :  { %s1831_s15 = smov 256   ;;  %s1832_s16 = smov 16  }
  0x1b   :  { %37 = dma.hbm_to_vmem [thread:$0]  %s2308_s2, 1024, %s32_s30, [#allocation3], %s1831_s15, %s1831_s15, %s1832_s16  }
  0x1c   :  { %1825 = dma.done.wait [#allocation4], 16  }
  0x1d   :  { %1826 = vsyncadd [#allocation4], 4294967280 }
  0x1e   :  { %1827 = dma.done.wait [#allocation3], 1024  }
  0x1f   :  { %1828 = vsyncadd [#allocation3], 4294966272 }
  0x20   :  { %52 = sfence }
  0x21   :  { %v62_v0 = vld [vmem:[#allocation5 + $0x8] sm:$0xff]  ;;  %v64_v1 = vld [vmem:[#allocation5 + $0x18] sm:$0xff]  ;;  %v61_v2 = vld [vmem:[#allocation5] sm:$0xff]  ;;  %vm106_vm0 = vcmask 1043456   ;;  %v1833_v7 = vmov 0.0   ;;  %vm1834_vm1 = vmmov 1   ;;  %v71_v52 = vlaneseq }
  0x22   :  { %v1470_v3 = vpack.c.bf16 %v64_v1, %v62_v0  ;;  %v63_v4 = vld [vmem:[#allocation5 + $0x10] sm:$0xff]  ;;  %v66_v5 = vld [vmem:[#allocation5 + $0x28] sm:$0xff]  ;;  %v68_v6 = vld [vmem:[#allocation5 + $0x38] sm:$0xf]  ;;  %177 = vmatprep.mubr.f32.mxu1 %v1833_v7  ;;  %710 = vmatprep.mubr.f32.mxu0 %v1833_v7  ;;  %vm81_vm3 = vcmask 228352   ;;  %s1835_s19 = smov 64  }
  0x23   :  { %v1472_v8 = vpack.c.bf16 %v63_v4, %v61_v2  ;;  %v1474_v9 = vpack.c.bf16 %v68_v6, %v66_v5  ;;  %vm1898_vm2 = vmpackc.low %vm106_vm0, %vm1834_vm1  ;;  %v65_v11 = vld [vmem:[#allocation5 + $0x20] sm:$0xff]  ;;  %v67_v12 = vld [vmem:[#allocation5 + $0x30] sm:$0xf]  ;;  %v72_v55 = vshrl.u32 %v71_v52, 7  ;;  %s1837_s20 = smov 96   ;;  %vm251_vm5 = vcmask 523264  }
  0x24   :  { %1471 = vmatprep.subr.bf16.mxu1 %v1470_v3  ;;  %v227_v13 = vld [vmem:[%s2309_s3 + $0x8] sm:$0xff]  ;;  %v229_v14 = vld [vmem:[%s2309_s3 + $0x18] sm:$0xff]  ;;  %v1477_v15 = vpack.c.bf16 %v67_v12, %v65_v11  ;;  %v226_v17 = vld [vmem:[%s2309_s3] sm:$0xff]  ;;  %s2094_s21 = sld [smem:[#allocation2 + $0x1]]  ;;  %vm374_vm6 = vcmask 261120   ;;  %s2112_s26 = sld [smem:[#allocation2 + $0x2]] }
  0x25   :  { %1473 = vmatpush1.bf16.msra.mxu1 %v1472_v8  ;;  %v1908_v16 = vpack.c.bf16 %v229_v14, %v227_v13  ;;  %v228_v18 = vld [vmem:[%s2309_s3 + $0x10] sm:$0xff]  ;;  %v231_v20 = vld [vmem:[%s2309_s3 + $0x28] sm:$0xff]  ;;  %v233_v21 = vld [vmem:[%s2309_s3 + $0x38] sm:$0xff]  ;;  %v73_v58 = vsub.s32 0, %v72_v55  ;;  %v77_v6 = vsub.s32 1, %v72_v55  ;;  %v243_v13 = vand.u32 127, %v71_v52 }
  0x26   :  { %1476 = vmatprep.subr.msk.bf16.mxu1 %vm1898_vm2, %v1474_v9  ;;  %v1918_v19 = vpack.c.bf16 %v228_v18, %v226_v17  ;;  %v1926_v22 = vpack.c.bf16 %v233_v21, %v231_v20  ;;  %v230_v23 = vld [vmem:[%s2309_s3 + $0x20] sm:$0xff]  ;;  %v232_v24 = vld [vmem:[%s2309_s3 + $0x30] sm:$0xff]  ;;  %v235_v26 = vld [vmem:[%s2309_s3 + $0x48] sm:$0xff]  ;;  %vm1283_vm7 = vcmask 1040384   ;;  %vm1285_vm8 = vcmask 1041408   ;;  %s2174_s0 = sld [smem:[#allocation2 + $0x4]] }
  0x27   :  { %1529 = vmatprep.subr.bf16.mxu0 %v1908_v16  ;;  %v53_v25 = vld [vmem:[%s2307_s1] sm:$0xff]  ;;  %v237_v27 = vld [vmem:[%s2309_s3 + $0x58] sm:$0xff]  ;;  %v1949_v28 = vpack.c.bf16 %v232_v24, %v230_v23  ;;  %v236_v30 = vld [vmem:[%s2309_s3 + $0x50] sm:$0xff]  ;;  %v2073_v14 = vadd.s32 128, %v243_v13  ;;  %vm1287_vm9 = vcmask 1042432   ;;  %vm1290_vm10 = vcmask 1044480  }
  0x28   :  { %1531 = vmatpush1.bf16.msra.mxu0 %v1918_v19  ;;  %v234_v29 = vld [vmem:[%s2309_s3 + $0x40] sm:$0xff]  ;;  %v1958_v31 = vpack.c.bf16 %v237_v27, %v235_v26  ;;  %v54_v32 = vld [vmem:[%s2307_s1 + $0x8] sm:$0xff]  ;;  %v241_v34 = vld [vmem:[%s2309_s3 + $0x78] sm:$0xff]  ;;  %vm1292_vm11 = vcmask 1045504   ;;  %vm1839_vm12 = vmmov 0   ;;  %vm1294_vm13 = vcmask 1046528  }
  0x29   :  { %1479 = vmatpush1.bf16.msk.msra.mxu1 %vm1898_vm2, %v1477_v15  ;;  %1533 = vmatprep.subr.bf16.mxu0 %v1926_v22  ;;  %v239_v33 = vld [vmem:[%s2309_s3 + $0x68] sm:$0xff]  ;;  %v1973_v35 = vpack.c.bf16 %v236_v30, %v234_v29  ;;  %v238_v36 = vld [vmem:[%s2309_s3 + $0x60] sm:$0xff]  ;;  %v240_v37 = vld [vmem:[%s2309_s3 + $0x70] sm:$0xff]  ;;  %vm248_vm4 = vcmp.lt.s32.totalorder %v2073_v14, 192  ;;  %s2142_s3 = sld [smem:[#allocation2 + $0x3]]  ;;  %v1838_v14 = vmov 0.0|0.0  }
  0x2a   :  { %1481 = vmatprep.subr.bf16.mxu1 %v1908_v16  ;;  %v1983_v38 = vpack.c.bf16 %v241_v34, %v239_v33  ;;  %v55_v39 = vld [vmem:[%s2307_s1 + $0x10] sm:$0xff]  ;;  %v1992_v40 = vpack.c.bf16 %v240_v37, %v238_v36  ;;  %v56_v41 = vld [vmem:[%s2307_s1 + $0x18] sm:$0xff]  ;;  %v57_v42 = vld [vmem:[%s2307_s1 + $0x20] sm:$0xff]  ;;  %s489_s22 = smul.f32 2.0, %s2094_s21  ;;  %s2238_s21 = sld [smem:[#allocation2 + $0x6]]  ;;  %vm1392_vm14 = vcmask 31744  }
  0x2b   :  { %v58_v43 = vld [vmem:[%s2307_s1 + $0x28] sm:$0xff]  ;;  %v59_v44 = vld [vmem:[%s2307_s1 + $0x30] sm:$0xff]  ;;  %v60_v45 = vld [vmem:[%s2307_s1 + $0x38] sm:$0xff]  ;;  %s2038_s1 = sld [smem:[#allocation2]]  ;;  %s619_s27 = smul.f32 2.0, %s2112_s26 }
  0x2c   :  { %1402 = vmatmul.mubr.msk.f32.vlgmr.msra.gmra.mrb[0].mxu1 %vm81_vm3, %v53_v25  ;;  %1535 = vmatpush1.bf16.msra.mxu0 %v1949_v28  ;;  %v69_v59 = vld [vmem:[%s2310_s4] sm:$0x3]  ;;  %s1836_s4 = smov 32   ;;  %s490_s23 = sadd.f32 1.0, %s489_s22 }
  0x2d   :  { %1483 = vmatpush1.bf16.msra.mxu1 %v1918_v19  ;;  %183 = vmatprep.mubr.f32.mxu1 %v1833_v7  ;;  %v2066_v62 = vrot.slane %v69_v59, %v73_v58  ;;  %v2070_v8 = vrot.slane %v69_v59, %v77_v6  ;;  %s620_s28 = sadd.f32 1.0, %s619_s27  ;;  %s879_s12 = smul.f32 2.0, %s2174_s0 }
  0x2e   :  { %1485 = vmatprep.subr.bf16.mxu1 %v1926_v22  ;;  %1537 = vmatprep.subr.bf16.mxu0 %v1958_v31  ;;  %v491_v30 = vstv %s490_s23 }
  0x2f   :  { %s749_s8 = smul.f32 2.0, %s2142_s3  ;;  %s880_s13 = sadd.f32 1.0, %s879_s12 }
  0x30   :  { %1403 = vmatmul.mubr.msk.f32.gmra.mrb[2].mxu1 %vm81_vm3, %v54_v32  ;;  %1539 = vmatpush1.bf16.msra.mxu0 %v1973_v35 }
  0x31   :  { %189 = vmatprep.mubr.f32.mxu1 %v1833_v7  ;;  %1487 = vmatpush1.bf16.msra.mxu1 %v1949_v28  ;;  %s358_s16 = smul.f32 2.0, %s2038_s1  ;;  %s750_s9 = sadd.f32 1.0, %s749_s8 }
  0x32   :  { %1489 = vmatprep.subr.bf16.mxu1 %v1958_v31  ;;  %1541 = vmatprep.subr.bf16.mxu0 %v1983_v38  ;;  %s2207_s1 = sld [smem:[#allocation2 + $0x5]] }
  0x33   :  { %s359_s17 = sadd.f32 1.0, %s358_s16 }
  0x34   :  { %1404 = vmatmul.mubr.msk.f32.gmra.mrb[4].mxu1 %vm81_vm3, %v55_v39  ;;  %1543 = vmatpush1.bf16.msra.mxu0 %v1992_v40 }
  0x35   :  { %195 = vmatprep.mubr.f32.mxu1 %v1833_v7  ;;  %1491 = vmatpush1.bf16.msra.mxu1 %v1973_v35  ;;  %v360_v46 = vstv %s359_s17 }
  0x36   :  { %1493 = vmatprep.subr.bf16.mxu1 %v1983_v38  ;;  %1545 = vmatprep.subr.bf16.mxu0 %v1908_v16  ;;  %1677 = vrcp.f32 %v360_v46 }
  0x38   :  { %1405 = vmatmul.mubr.msk.f32.gmra.mrb[6].mxu1 %vm81_vm3, %v56_v41 }
  0x39   :  { %201 = vmatprep.mubr.f32.mxu1 %v1833_v7  ;;  %1495 = vmatpush1.bf16.msra.mxu1 %v1992_v40 }
  0x3a   :  { %1497 = vmatprep.subr.bf16.mxu1 %v1908_v16 }
  0x3c   :  { %1406 = vmatmul.mubr.msk.f32.gmra.mrb[8].mxu1 %vm81_vm3, %v57_v42 }
  0x3d   :  { %207 = vmatprep.mubr.f32.mxu1 %v1833_v7 }
  0x40   :  { %1407 = vmatmul.mubr.msk.f32.gmra.mrb[10].mxu1 %vm81_vm3, %v58_v43  ;;  %v1678_v47 = vpop.eup %1677 }
  0x41   :  { %213 = vmatprep.mubr.f32.mxu1 %v1833_v7  ;;  %1652 = vpush %v1678_v47 }
  0x44   :  { %1408 = vmatmul.mubr.msk.f32.gmra.mrb[12].mxu1 %vm81_vm3, %v59_v44 }
  0x45   :  { %219 = vmatprep.mubr.f32.mxu1 %v1833_v7 }
  0x48   :  { %1409 = vmatmul.mubr.msk.f32.gmra.mrb[14].mxu1 %vm81_vm3, %v60_v45 }
  0x49   :  { %319 = vmatprep.mubr.f32.mxu1 %v1833_v7 }
  0x4c   :  { %320 = vmatmul.mubr.f32.vlgmr.msra.gmra.mrb[0].mxu1 %v1833_v7 }
  0x4d   :  { %1499 = vmatpush1.bf16.msra.mxu1 %v1918_v19  ;;  %450 = vmatprep.mubr.f32.mxu1 %v1833_v7 }
  0x4e   :  { %1501 = vmatprep.subr.bf16.mxu1 %v1926_v22 }
  0x51   :  { %1503 = vmatpush1.bf16.msra.mxu1 %v1949_v28 }
  0x52   :  { %1505 = vmatprep.subr.bf16.mxu1 %v1958_v31 }
  0x55   :  { %1507 = vmatpush1.bf16.msra.mxu1 %v1973_v35 }
  0x56   :  { %1509 = vmatprep.subr.bf16.mxu1 %v1983_v38 }
  0x59   :  { %1511 = vmatpush1.bf16.msra.mxu1 %v1992_v40 }
  0x5a   :  { %1513 = vmatprep.subr.bf16.mxu1 %v1908_v16 }
  0x72   :  { %s1653_s24 = spop %1652 }
  0x73   :  { %s366_s25 = smul.f32 %s1653_s24, %s358_s16  ;;  %v376_v59 = vstv %s1653_s24 }
  0x74   :  { %s1009_s16 = smul.f32 2.0, %s2207_s1 }
  0x75   :  { %v378_v55 = vstv %s366_s25 }
  0x76   :  { %s1010_s17 = sadd.f32 1.0, %s1009_s16 }
 0x10b   :  { %v2043_v48 = vpop.f32.mrb[6].mxu1 }
 0x10c   :  { %v2045_v49 = vpop.f32.mrb[7].mxu1 }
 0x10f   :  { %v2047_v50 = vpop.f32.mrb[8].mxu1 }
 0x110   :  { %v2049_v51 = vpop.f32.mrb[9].mxu1 }
 0x113   :  { %v2051_v53 = vpop.f32.mrb[10].mxu1 }
 0x114   :  { %v2053_v54 = vpop.f32.mrb[11].mxu1 }
 0x117   :  { %v2055_v56 = vpop.f32.mrb[12].mxu1 }
 0x118   :  { %v2057_v57 = vpop.f32.mrb[13].mxu1 }
 0x11b   :  { %v2062_v60 = vpop.f32.mrb[14].mxu1 }
 0x11c   :  { %v2064_v61 = vpop.f32.mrb[15].mxu1 }
 0x11f   :  { %v321_v63 = vpop.f32.mrb[0].mxu1 }
 0x120   :  { %v1620_v0 = vadd.f32 %v321_v63, %v2066_v62  ;;  %v323_v1 = vpop.f32.mrb[1].mxu1 }
 0x121   :  { %v1621_v9 = vadd.f32 %v323_v1, %v2070_v8 }
 0x122   :  { %v1410_v2 = vmul.f32 -1.442695, %v1620_v0 }
 0x123   :  { %v1411_v10 = vmul.f32 -1.442695, %v1621_v9 }
 0x124   :  { %1679 = vpow2.f32 %v1410_v2 }
 0x12e   :  { %v1680_v3 = vpop.eup %1679 }
 0x12f   :  { %v336_v4 = vadd.f32 1.0, %v1680_v3 }
 0x131   :  { %1681 = vrcp.f32 %v336_v4 }
 0x132   :  { %1683 = vpow2.f32 %v1411_v10 }
 0x13b   :  { %v1682_v5 = vpop.eup %1681 }
 0x13c   :  { %345 = vrot.lane.b32.xlu0 %v1682_v5, %s1835_s19  ;;  %v1684_v11 = vpop.eup %1683 }
 0x13d   :  { %v337_v12 = vadd.f32 1.0, %v1684_v11 }
 0x13f   :  { %1685 = vrcp.f32 %v337_v12 }
 0x140   :  { %1687 = vtanh.f32 %v1621_v9 }
 0x149   :  { %v1686_v15 = vpop.eup %1685 }
 0x14a   :  { %v1688_v17 = vpop.eup %1687 }
 0x14b   :  { %v343_v18 = vsel %vm248_vm4, %v1688_v17, %v1686_v15  ;;  %v621_v17 = vstv %s620_s28 }
 0x14c   :  { %v349_v23 = vmul.f32 %v1682_v5, %v343_v18 }
 0x1ae   :  { %v346_v20 = vpop.permute.xlu0 %345 }
 0x1af   :  { %v348_v21 = vmul.f32 0.0, %v346_v20 }
 0x1b1   :  { %v350_v24 = vadd.f32 %v349_v23, %v348_v21 }
 0x1b3   :  { %1689 = vtanh.f32 %v350_v24  ;;  %v377_v2 = vmul.f32 %v376_v59, %v350_v24 }
 0x1b4   :  { %1691 = vrcp.f32 %v491_v30 }
 0x1bd   :  { %v1690_v25 = vpop.eup %1689 }
 0x1be   :  { %353 = vrot.lane.b32.xlu0 %v1690_v25, %s1835_s19  ;;  %v1692_v32 = vpop.eup %1691 }
 0x1bf   :  { %1654 = vpush %v1692_v32 }
 0x1c2   :  { %371 = vrot.lane.b32.xlu0 %v350_v24, %s1836_s4 }
 0x1f0   :  { %s1655_s29 = spop %1654 }
 0x1f1   :  { %s497_s30 = smul.f32 %s1655_s29, %s489_s22 }
 0x1f2   :  { %s1139_s22 = smul.f32 2.0, %s2238_s21 }
 0x1f4   :  { %s1140_s23 = sadd.f32 1.0, %s1139_s22 }
 0x230   :  { %v354_v26 = vpop.permute.xlu0 %353 }
 0x231   :  { %v2080_v27 = vmul.f32 %v354_v26, %v343_v18 }
 0x233   :  { %382 = vrot.lane.b32.xlu1 %v2080_v27, %s1835_s19 }
 0x234   :  { %v372_v52 = vpop.permute.xlu0 %371 }
 0x237   :  { %368 = vrot.lane.b32.xlu1 %v350_v24, %s1837_s20 }
 0x2a5   :  { %v383_v29 = vpop.permute.xlu1 %382 }
 0x2a6   :  { %1412 = vmatmul.mubr.msk.f32.vlgmr.msra.gmra.mrb[2].mxu1 %vm251_vm5, %v383_v29 }
 0x2a7   :  { %1515 = vmatpush1.bf16.msra.mxu1 %v1918_v19  ;;  %580 = vmatprep.mubr.f32.mxu1 %v1833_v7 }
 0x2a8   :  { %1517 = vmatprep.subr.bf16.mxu1 %v1926_v22 }
 0x2a9   :  { %v369_v47 = vpop.permute.xlu1 %368 }
 0x2aa   :  { %v375_v58 = vsel %vm374_vm6, %v369_v47, %v372_v52 }
 0x2ab   :  { %1519 = vmatpush1.bf16.msra.mxu1 %v1949_v28  ;;  %v379_v0 = vmul.f32 %v378_v55, %v375_v58 }
 0x2ac   :  { %1521 = vmatprep.subr.bf16.mxu1 %v1958_v31 }
 0x2ad   :  { %v380_v4 = vadd.f32 %v379_v0, %v377_v2 }
 0x2af   :  { %1523 = vmatpush1.bf16.msra.mxu1 %v1973_v35 }
 0x2b0   :  { %1525 = vmatprep.subr.bf16.mxu1 %v1983_v38 }
 0x2b3   :  { %1527 = vmatpush1.bf16.msra.mxu1 %v1992_v40 }
 0x2b4   :  { %1608 = vmatprep.subr.bf16.mxu1 %v1838_v14 }
 0x379   :  { %v452_v33 = vpop.f32.mrb[2].mxu1 }
 0x37a   :  { %v1622_v34 = vadd.f32 %v452_v33, %v2066_v62  ;;  %v454_v36 = vpop.f32.mrb[3].mxu1 }
 0x37b   :  { %v1623_v43 = vadd.f32 %v454_v36, %v2070_v8 }
 0x37c   :  { %v1413_v37 = vmul.f32 -1.442695, %v1622_v34 }
 0x37d   :  { %v1414_v44 = vmul.f32 -1.442695, %v1623_v43 }
 0x37e   :  { %1693 = vpow2.f32 %v1413_v37 }
 0x388   :  { %v1694_v39 = vpop.eup %1693 }
 0x389   :  { %v467_v41 = vadd.f32 1.0, %v1694_v39  ;;  %v508_v39 = vstv %s497_s30 }
 0x38b   :  { %1695 = vrcp.f32 %v467_v41 }
 0x38c   :  { %1697 = vpow2.f32 %v1414_v44 }
 0x395   :  { %v1696_v42 = vpop.eup %1695 }
 0x396   :  { %476 = vrot.lane.b32.xlu1 %v1696_v42, %s1835_s19  ;;  %v1698_v45 = vpop.eup %1697 }
 0x397   :  { %v468_v46 = vadd.f32 1.0, %v1698_v45 }
 0x399   :  { %1699 = vrcp.f32 %v468_v46 }
 0x39a   :  { %1701 = vtanh.f32 %v1623_v43 }
 0x3a3   :  { %v1700_v63 = vpop.eup %1699 }
 0x3a4   :  { %v1702_v1 = vpop.eup %1701 }
 0x3a5   :  { %v474_v3 = vsel %vm248_vm4, %v1702_v1, %v1700_v63 }
 0x3a6   :  { %v480_v6 = vmul.f32 %v1696_v42, %v474_v3  ;;  %v506_v42 = vstv %s1655_s29 }
 0x408   :  { %v477_v5 = vpop.permute.xlu1 %476 }
 0x409   :  { %v479_v9 = vmul.f32 %v477_v5, %v380_v4 }
 0x40b   :  { %v481_v10 = vadd.f32 %v480_v6, %v479_v9 }
 0x40d   :  { %1703 = vtanh.f32 %v481_v10  ;;  %v507_v46 = vmul.f32 %v506_v42, %v481_v10 }
 0x40e   :  { %1705 = vrcp.f32 %v621_v17 }
 0x417   :  { %v1704_v11 = vpop.eup %1703 }
 0x418   :  { %484 = vrot.lane.b32.xlu0 %v1704_v11, %s1835_s19  ;;  %v1706_v18 = vpop.eup %1705  ;;  %v198_v11 = vadd.f32 %v2043_v48, %v2066_v62 }
 0x419   :  { %1656 = vpush %v1706_v18 }
 0x41c   :  { %499 = vrot.lane.b32.xlu0 %v481_v10, %s1837_s20 }
 0x44a   :  { %s1657_s10 = spop %1656 }
 0x44b   :  { %s627_s11 = smul.f32 %s1657_s10, %s619_s27 }
 0x48a   :  { %v485_v12 = vpop.permute.xlu0 %484 }
 0x48b   :  { %v487_v13 = vmul.f32 %v485_v12, %v474_v3  ;;  %v200_v12 = vadd.f32 %v2045_v49, %v2070_v8 }
 0x48d   :  { %512 = vrot.lane.b32.xlu1 %v487_v13, %s1835_s19  ;;  %v1268_v1 = vrot.slane %v487_v13, 7 }
 0x48e   :  { %v500_v37 = vpop.permute.xlu0 %499 }
 0x48f   :  { %v1284_v5 = vsel %vm1283_vm7, %v2080_v27, %v1268_v1  ;;  %v751_v27 = vstv %s750_s9 }
 0x491   :  { %502 = vrot.lane.b32.xlu1 %v481_v10, %s1836_s4 }
 0x4ff   :  { %v513_v15 = vpop.permute.xlu1 %512 }
 0x500   :  { %1416 = vmatmul.mubr.msk.f32.vlgmr.msra.gmra.mrb[4].mxu1 %vm251_vm5, %v513_v15 }
 0x501   :  { %1467 = vmatprep.mubr.msk.f32.mxu1 %vm1839_vm12, %v1833_v7 }
 0x503   :  { %v503_v36 = vpop.permute.xlu1 %502 }
 0x504   :  { %v505_v41 = vsel %vm374_vm6, %v500_v37, %v503_v36 }
 0x505   :  { %v509_v44 = vmul.f32 %v508_v39, %v505_v41 }
 0x507   :  { %v510_v52 = vadd.f32 %v509_v44, %v507_v46 }
 0x5d3   :  { %v582_v20 = vpop.f32.mrb[4].mxu1 }
 0x5d4   :  { %v1624_v21 = vadd.f32 %v582_v20, %v2066_v62  ;;  %v584_v23 = vpop.f32.mrb[5].mxu1 }
 0x5d5   :  { %v1625_v30 = vadd.f32 %v584_v23, %v2070_v8 }
 0x5d6   :  { %v1417_v24 = vmul.f32 -1.442695, %v1624_v21 }
 0x5d7   :  { %v1418_v32 = vmul.f32 -1.442695, %v1625_v30 }
 0x5d8   :  { %1707 = vpow2.f32 %v1417_v24 }
 0x5e2   :  { %v1708_v25 = vpop.eup %1707 }
 0x5e3   :  { %v597_v26 = vadd.f32 1.0, %v1708_v25 }
 0x5e5   :  { %1709 = vrcp.f32 %v597_v26 }
 0x5e6   :  { %1711 = vpow2.f32 %v1418_v32 }
 0x5ef   :  { %v1710_v29 = vpop.eup %1709 }
 0x5f0   :  { %606 = vrot.lane.b32.xlu0 %v1710_v29, %s1835_s19  ;;  %v1712_v33 = vpop.eup %1711 }
 0x5f1   :  { %v598_v34 = vadd.f32 1.0, %v1712_v33  ;;  %v636_v33 = vstv %s1657_s10 }
 0x5f3   :  { %1713 = vrcp.f32 %v598_v34 }
 0x5f4   :  { %1715 = vtanh.f32 %v1625_v30  ;;  %v638_v30 = vstv %s627_s11 }
 0x5fd   :  { %v1714_v43 = vpop.eup %1713 }
 0x5fe   :  { %v1716_v45 = vpop.eup %1715 }
 0x5ff   :  { %v604_v47 = vsel %vm248_vm4, %v1716_v45, %v1714_v43 }
 0x600   :  { %v610_v58 = vmul.f32 %v1710_v29, %v604_v47 }
 0x662   :  { %v607_v55 = vpop.permute.xlu0 %606 }
 0x663   :  { %v609_v59 = vmul.f32 %v607_v55, %v510_v52 }
 0x665   :  { %v611_v63 = vadd.f32 %v610_v58, %v609_v59 }
 0x667   :  { %1717 = vtanh.f32 %v611_v63  ;;  %v637_v39 = vmul.f32 %v636_v33, %v611_v63 }
 0x668   :  { %1719 = vrcp.f32 %v751_v27 }
 0x671   :  { %v1718_v0 = vpop.eup %1717 }
 0x672   :  { %614 = vrot.lane.b32.xlu1 %v1718_v0, %s1835_s19  ;;  %v1720_v10 = vpop.eup %1719  ;;  %v881_v0 = vstv %s880_s13 }
 0x673   :  { %1658 = vpush %v1720_v10 }
 0x676   :  { %629 = vrot.lane.b32.xlu1 %v611_v63, %s1837_s20 }
 0x6a4   :  { %s1659_s14 = spop %1658 }
 0x6a5   :  { %s757_s15 = smul.f32 %s1659_s14, %s749_s8 }
 0x6e4   :  { %v615_v2 = vpop.permute.xlu1 %614 }
 0x6e5   :  { %v617_v3 = vmul.f32 %v615_v2, %v604_v47  ;;  %v204_v2 = vadd.f32 %v2047_v50, %v2066_v62 }
 0x6e7   :  { %v1270_v4 = vrot.slane %v617_v3, 6  ;;  %642 = vrot.lane.b32.xlu0 %v617_v3, %s1835_s19  ;;  %v206_v3 = vadd.f32 %v2049_v51, %v2070_v8 }
 0x6e8   :  { %v630_v29 = vpop.permute.xlu1 %629 }
 0x6e9   :  { %v2129_v6 = vsel %vm1285_vm8, %v1284_v5, %v1270_v4 }
 0x6eb   :  { %632 = vrot.lane.b32.xlu0 %v611_v63, %s1836_s4 }
 0x759   :  { %v643_v9 = vpop.permute.xlu0 %642 }
 0x75a   :  { %1420 = vmatmul.mubr.msk.f32.vlgmr.msra.gmra.mrb[0].mxu0 %vm251_vm5, %v643_v9 }
 0x75b   :  { %1547 = vmatpush1.bf16.msra.mxu0 %v1918_v19  ;;  %840 = vmatprep.mubr.f32.mxu0 %v1833_v7 }
 0x75c   :  { %1549 = vmatprep.subr.bf16.mxu0 %v1926_v22 }
 0x75d   :  { %v633_v49 = vpop.permute.xlu0 %632 }
 0x75e   :  { %v635_v32 = vsel %vm374_vm6, %v630_v29, %v633_v49 }
 0x75f   :  { %1551 = vmatpush1.bf16.msra.mxu0 %v1949_v28  ;;  %v639_v36 = vmul.f32 %v638_v30, %v635_v32 }
 0x760   :  { %1553 = vmatprep.subr.bf16.mxu0 %v1958_v31 }
 0x761   :  { %v640_v42 = vadd.f32 %v639_v36, %v637_v39 }
 0x763   :  { %1555 = vmatpush1.bf16.msra.mxu0 %v1973_v35 }
 0x764   :  { %1557 = vmatprep.subr.bf16.mxu0 %v1983_v38 }
 0x767   :  { %1559 = vmatpush1.bf16.msra.mxu0 %v1992_v40 }
 0x768   :  { %1561 = vmatprep.subr.bf16.mxu0 %v1908_v16 }
 0x82d   :  { %v712_v13 = vpop.f32.mrb[0].mxu0 }
 0x82e   :  { %v717_v15 = vadd.f32 %v712_v13, %v198_v11  ;;  %v714_v17 = vpop.f32.mrb[1].mxu0 }
 0x82f   :  { %v718_v18 = vadd.f32 %v714_v17, %v200_v12 }
 0x830   :  { %v1421_v20 = vmul.f32 -1.442695, %v717_v15 }
 0x831   :  { %v1422_v25 = vmul.f32 -1.442695, %v718_v18 }
 0x832   :  { %1721 = vpow2.f32 %v1421_v20 }
 0x83c   :  { %v1722_v21 = vpop.eup %1721 }
 0x83d   :  { %v727_v23 = vadd.f32 1.0, %v1722_v21  ;;  %v766_v21 = vstv %s1659_s14 }
 0x83f   :  { %1723 = vrcp.f32 %v727_v23 }
 0x840   :  { %1725 = vpow2.f32 %v1422_v25 }
 0x849   :  { %v1724_v24 = vpop.eup %1723 }
 0x84a   :  { %736 = vrot.lane.b32.xlu1 %v1724_v24, %s1835_s19  ;;  %v1726_v26 = vpop.eup %1725 }
 0x84b   :  { %v728_v48 = vadd.f32 1.0, %v1726_v26 }
 0x84d   :  { %1727 = vrcp.f32 %v728_v48 }
 0x84e   :  { %1729 = vtanh.f32 %v718_v18  ;;  %v768_v18 = vstv %s757_s15 }
 0x857   :  { %v1728_v34 = vpop.eup %1727 }
 0x858   :  { %v1730_v37 = vpop.eup %1729 }
 0x859   :  { %v734_v41 = vsel %vm248_vm4, %v1730_v37, %v1728_v34 }
 0x85a   :  { %v740_v45 = vmul.f32 %v1724_v24, %v734_v41 }
 0x8bc   :  { %v737_v43 = vpop.permute.xlu1 %736 }
 0x8bd   :  { %v739_v44 = vmul.f32 %v737_v43, %v640_v42  ;;  %v1011_v43 = vstv %s1010_s17 }
 0x8bf   :  { %v741_v46 = vadd.f32 %v740_v45, %v739_v44  ;;  %v210_v45 = vadd.f32 %v2051_v53, %v2066_v62 }
 0x8c1   :  { %1731 = vtanh.f32 %v741_v46  ;;  %v767_v26 = vmul.f32 %v766_v21, %v741_v46 }
 0x8c2   :  { %1733 = vrcp.f32 %v881_v0 }
 0x8cb   :  { %v1732_v47 = vpop.eup %1731 }
 0x8cc   :  { %744 = vrot.lane.b32.xlu0 %v1732_v47, %s1835_s19  ;;  %v1734_v1 = vpop.eup %1733 }
 0x8cd   :  { %1660 = vpush %v1734_v1 }
 0x8d0   :  { %759 = vrot.lane.b32.xlu0 %v741_v46, %s1837_s20 }
 0x8fe   :  { %s1661_s18 = spop %1660 }
 0x8ff   :  { %s887_s2 = smul.f32 %s1661_s18, %s879_s12 }
 0x93e   :  { %v745_v52 = vpop.permute.xlu0 %744 }
 0x93f   :  { %v747_v55 = vmul.f32 %v745_v52, %v734_v41 }
 0x941   :  { %v1272_v58 = vrot.slane %v747_v55, 5  ;;  %772 = vrot.lane.b32.xlu1 %v747_v55, %s1835_s19 }
 0x942   :  { %v760_v17 = vpop.permute.xlu0 %759 }
 0x943   :  { %v2161_v59 = vsel %vm1287_vm9, %v2129_v6, %v1272_v58 }
 0x945   :  { %762 = vrot.lane.b32.xlu1 %v741_v46, %s1836_s4  ;;  %v212_v46 = vadd.f32 %v2053_v54, %v2070_v8 }
 0x9b3   :  { %v773_v63 = vpop.permute.xlu1 %772 }
 0x9b4   :  { %1424 = vmatmul.mubr.msk.f32.vlgmr.msra.gmra.mrb[2].mxu0 %vm251_vm5, %v773_v63 }
 0x9b5   :  { %1563 = vmatpush1.bf16.msra.mxu0 %v1918_v19  ;;  %970 = vmatprep.mubr.f32.mxu0 %v1833_v7 }
 0x9b6   :  { %1565 = vmatprep.subr.bf16.mxu0 %v1926_v22 }
 0x9b7   :  { %v763_v51 = vpop.permute.xlu1 %762 }
 0x9b8   :  { %v765_v20 = vsel %vm374_vm6, %v760_v17, %v763_v51 }
 0x9b9   :  { %1567 = vmatpush1.bf16.msra.mxu0 %v1949_v28  ;;  %v769_v24 = vmul.f32 %v768_v18, %v765_v20 }
 0x9ba   :  { %1569 = vmatprep.subr.bf16.mxu0 %v1958_v31 }
 0x9bb   :  { %v770_v49 = vadd.f32 %v769_v24, %v767_v26 }
 0x9bd   :  { %1571 = vmatpush1.bf16.msra.mxu0 %v1973_v35 }
 0x9be   :  { %1573 = vmatprep.subr.bf16.mxu0 %v1983_v38 }
 0x9c1   :  { %1575 = vmatpush1.bf16.msra.mxu0 %v1992_v40 }
 0x9c2   :  { %1577 = vmatprep.subr.bf16.mxu0 %v1908_v16 }
 0xa87   :  { %v842_v4 = vpop.f32.mrb[2].mxu0 }
 0xa88   :  { %v847_v5 = vadd.f32 %v842_v4, %v204_v2  ;;  %v844_v6 = vpop.f32.mrb[3].mxu0  ;;  %v898_v4 = vstv %s887_s2 }
 0xa89   :  { %v848_v9 = vadd.f32 %v844_v6, %v206_v3  ;;  %v896_v6 = vstv %s1661_s18 }
 0xa8a   :  { %v1425_v27 = vmul.f32 -1.442695, %v847_v5 }
 0xa8b   :  { %v1426_v13 = vmul.f32 -1.442695, %v848_v9 }
 0xa8c   :  { %1735 = vpow2.f32 %v1425_v27 }
 0xa96   :  { %v1736_v10 = vpop.eup %1735 }
 0xa97   :  { %v857_v11 = vadd.f32 1.0, %v1736_v10 }
 0xa99   :  { %1737 = vrcp.f32 %v857_v11 }
 0xa9a   :  { %1739 = vpow2.f32 %v1426_v13 }
 0xaa3   :  { %v1738_v12 = vpop.eup %1737 }
 0xaa4   :  { %866 = vrot.lane.b32.xlu0 %v1738_v12, %s1835_s19  ;;  %v1740_v15 = vpop.eup %1739 }
 0xaa5   :  { %v858_v50 = vadd.f32 1.0, %v1740_v15 }
 0xaa7   :  { %1741 = vrcp.f32 %v858_v50 }
 0xaa8   :  { %1743 = vtanh.f32 %v848_v9 }
 0xab1   :  { %v1742_v23 = vpop.eup %1741 }
 0xab2   :  { %v1744_v25 = vpop.eup %1743 }
 0xab3   :  { %v864_v48 = vsel %vm248_vm4, %v1744_v25, %v1742_v23 }
 0xab4   :  { %v870_v30 = vmul.f32 %v1738_v12, %v864_v48 }
 0xb16   :  { %v867_v29 = vpop.permute.xlu0 %866 }
 0xb17   :  { %v869_v32 = vmul.f32 %v867_v29, %v770_v49 }
 0xb19   :  { %v871_v33 = vadd.f32 %v870_v30, %v869_v32 }
 0xb1b   :  { %1745 = vtanh.f32 %v871_v33  ;;  %v897_v11 = vmul.f32 %v896_v6, %v871_v33 }
 0xb1c   :  { %1747 = vrcp.f32 %v1011_v43 }
 0xb25   :  { %v1746_v34 = vpop.eup %1745 }
 0xb26   :  { %874 = vrot.lane.b32.xlu1 %v1746_v34, %s1835_s19  ;;  %v1748_v44 = vpop.eup %1747 }
 0xb27   :  { %1662 = vpush %v1748_v44 }
 0xb2a   :  { %889 = vrot.lane.b32.xlu1 %v871_v33, %s1837_s20 }
 0xb58   :  { %s1663_s24 = spop %1662 }
 0xb59   :  { %s1017_s25 = smul.f32 %s1663_s24, %s1009_s16 }
 0xb98   :  { %v875_v36 = vpop.permute.xlu1 %874 }
 0xb99   :  { %v877_v37 = vmul.f32 %v875_v36, %v864_v48  ;;  %v1028_v36 = vstv %s1017_s25 }
 0xb9b   :  { %v1274_v39 = vrot.slane %v877_v37, 4  ;;  %902 = vrot.lane.b32.xlu0 %v877_v37, %s1835_s19 }
 0xb9c   :  { %v890_v3 = vpop.permute.xlu1 %889 }
 0xb9d   :  { %v2194_v41 = vsel %vm106_vm0, %v2161_v59, %v1274_v39  ;;  %v1026_v39 = vstv %s1663_s24 }
 0xb9f   :  { %892 = vrot.lane.b32.xlu0 %v871_v33, %s1836_s4 }
 0xc0d   :  { %v903_v42 = vpop.permute.xlu0 %902 }
 0xc0e   :  { %1428 = vmatmul.mubr.msk.f32.vlgmr.msra.gmra.mrb[4].mxu0 %vm251_vm5, %v903_v42 }
 0xc0f   :  { %1579 = vmatpush1.bf16.msra.mxu0 %v1918_v19  ;;  %1100 = vmatprep.mubr.f32.mxu0 %v1833_v7 }
 0xc10   :  { %1581 = vmatprep.subr.bf16.mxu0 %v1926_v22 }
 0xc11   :  { %v893_v54 = vpop.permute.xlu0 %892 }
 0xc12   :  { %v895_v5 = vsel %vm374_vm6, %v890_v3, %v893_v54  ;;  %v224_v54 = vadd.f32 %v2064_v61, %v2070_v8 }
 0xc13   :  { %1583 = vmatpush1.bf16.msra.mxu0 %v1949_v28  ;;  %v899_v27 = vmul.f32 %v898_v4, %v895_v5 }
 0xc14   :  { %1585 = vmatprep.subr.bf16.mxu0 %v1958_v31 }
 0xc15   :  { %v900_v13 = vadd.f32 %v899_v27, %v897_v11 }
 0xc17   :  { %1587 = vmatpush1.bf16.msra.mxu0 %v1973_v35 }
 0xc18   :  { %1589 = vmatprep.subr.bf16.mxu0 %v1983_v38 }
 0xc1b   :  { %1591 = vmatpush1.bf16.msra.mxu0 %v1992_v40 }
 0xc1c   :  { %1593 = vmatprep.subr.bf16.mxu0 %v1908_v16 }
 0xce1   :  { %v972_v47 = vpop.f32.mrb[4].mxu0 }
 0xce2   :  { %v977_v52 = vadd.f32 %v972_v47, %v210_v45  ;;  %v974_v16 = vpop.f32.mrb[5].mxu0 }
 0xce3   :  { %v978_v55 = vadd.f32 %v974_v16, %v212_v46 }
 0xce4   :  { %v1429_v58 = vmul.f32 -1.442695, %v977_v52 }
 0xce5   :  { %v1430_v1 = vmul.f32 -1.442695, %v978_v55 }
 0xce6   :  { %1749 = vpow2.f32 %v1429_v58 }
 0xcf0   :  { %v1750_v59 = vpop.eup %1749 }
 0xcf1   :  { %v987_v63 = vadd.f32 1.0, %v1750_v59 }
 0xcf3   :  { %1751 = vrcp.f32 %v987_v63 }
 0xcf4   :  { %1753 = vpow2.f32 %v1430_v1 }
 0xcfd   :  { %v1752_v0 = vpop.eup %1751 }
 0xcfe   :  { %996 = vrot.lane.b32.xlu1 %v1752_v0, %s1835_s19  ;;  %v1754_v2 = vpop.eup %1753 }
 0xcff   :  { %v988_v53 = vadd.f32 1.0, %v1754_v2 }
 0xd01   :  { %1755 = vrcp.f32 %v988_v53  ;;  %v222_v53 = vadd.f32 %v2062_v60, %v2066_v62 }
 0xd02   :  { %1757 = vtanh.f32 %v978_v55 }
 0xd0b   :  { %v1756_v9 = vpop.eup %1755 }
 0xd0c   :  { %v1758_v10 = vpop.eup %1757 }
 0xd0d   :  { %v994_v12 = vsel %vm248_vm4, %v1758_v10, %v1756_v9 }
 0xd0e   :  { %v1000_v50 = vmul.f32 %v1752_v0, %v994_v12 }
 0xd70   :  { %v997_v15 = vpop.permute.xlu1 %996 }
 0xd71   :  { %v999_v51 = vmul.f32 %v997_v15, %v900_v13 }
 0xd73   :  { %v1001_v17 = vadd.f32 %v1000_v50, %v999_v51 }
 0xd75   :  { %1759 = vtanh.f32 %v1001_v17  ;;  %v1027_v44 = vmul.f32 %v1026_v39, %v1001_v17  ;;  %v1439_v39 = vld [vmem:[%s2312_s6] ss:$0 sm:$0xff] }
 0xd7f   :  { %v1760_v18 = vpop.eup %1759 }
 0xd80   :  { %1004 = vrot.lane.b32.xlu0 %v1760_v18, %s1835_s19 }
 0xd84   :  { %1019 = vrot.lane.b32.xlu0 %v1001_v17, %s1837_s20 }
 0xdf2   :  { %v1005_v20 = vpop.permute.xlu0 %1004 }
 0xdf3   :  { %v1007_v21 = vmul.f32 %v1005_v20, %v994_v12 }
 0xdf5   :  { %v1276_v23 = vrot.slane %v1007_v21, 3  ;;  %1032 = vrot.lane.b32.xlu1 %v1007_v21, %s1835_s19 }
 0xdf6   :  { %v1020_v34 = vpop.permute.xlu0 %1019 }
 0xdf7   :  { %v2226_v24 = vsel %vm1290_vm10, %v2194_v41, %v1276_v23 }
 0xdf9   :  { %1022 = vrot.lane.b32.xlu1 %v1001_v17, %s1836_s4 }
 0xe67   :  { %v1033_v25 = vpop.permute.xlu1 %1032 }
 0xe68   :  { %1432 = vmatmul.mubr.msk.f32.vlgmr.msra.gmra.mrb[6].mxu0 %vm251_vm5, %v1033_v25 }
 0xe69   :  { %1595 = vmatpush1.bf16.msra.mxu0 %v1918_v19  ;;  %1230 = vmatprep.mubr.f32.mxu0 %v1833_v7  ;;  %v1141_v19 = vstv %s1140_s23  ;;  %v1302_v7 = vld [vmem:[%s2311_s5 + $0x30] sm:$0xff] }
 0xe6a   :  { %1597 = vmatprep.subr.bf16.mxu0 %v1926_v22  ;;  %1761 = vrcp.f32 %v1141_v19 }
 0xe6d   :  { %1599 = vmatpush1.bf16.msra.mxu0 %v1949_v28  ;;  %v216_v28 = vadd.f32 %v2055_v56, %v2066_v62 }
 0xe6e   :  { %1601 = vmatprep.subr.bf16.mxu0 %v1958_v31  ;;  %v218_v31 = vadd.f32 %v2057_v57, %v2070_v8  ;;  %v1023_v57 = vpop.permute.xlu1 %1022 }
 0xe6f   :  { %v1025_v37 = vsel %vm374_vm6, %v1020_v34, %v1023_v57 }
 0xe70   :  { %v1029_v42 = vmul.f32 %v1028_v36, %v1025_v37 }
 0xe71   :  { %1603 = vmatpush1.bf16.msra.mxu0 %v1973_v35 }
 0xe72   :  { %1605 = vmatprep.subr.bf16.mxu0 %v1983_v38  ;;  %v1030_v46 = vadd.f32 %v1029_v42, %v1027_v44 }
 0xe74   :  { %v1762_v22 = vpop.eup %1761 }
 0xe75   :  { %1607 = vmatpush1.bf16.msra.mxu0 %v1992_v40  ;;  %1664 = vpush %v1762_v22 }
 0xf3b   :  { %v1102_v35 = vpop.f32.mrb[6].mxu0 }
 0xf3c   :  { %v1107_v38 = vadd.f32 %v1102_v35, %v216_v28  ;;  %v1104_v40 = vpop.f32.mrb[7].mxu0  ;;  %v1296_v28 = vld [vmem:[%s2311_s5] sm:$0xff]  ;;  %v1298_v35 = vld [vmem:[%s2311_s5 + $0x10] sm:$0xff] }
 0xf3d   :  { %v1108_v26 = vadd.f32 %v1104_v40, %v218_v31  ;;  %v1297_v31 = vld [vmem:[%s2311_s5 + $0x8] sm:$0xff]  ;;  %v1299_v40 = vld [vmem:[%s2311_s5 + $0x18] sm:$0xff] }
 0xf3e   :  { %v1433_v48 = vmul.f32 -1.442695, %v1107_v38  ;;  %v1609_v38 = vpack.c.bf16 %v1297_v31, %v1296_v28 }
 0xf3f   :  { %v1434_v32 = vmul.f32 -1.442695, %v1108_v26 }
 0xf40   :  { %1763 = vpow2.f32 %v1433_v48  ;;  %1610 = vmatpush3.bf16.msra.mxu1 %v1609_v38  ;;  %v1300_v48 = vld [vmem:[%s2311_s5 + $0x20] sm:$0xff] }
 0xf41   :  { %1611 = vmatprep.subr.bf16.mxu1 %v1838_v14 }
 0xf4a   :  { %v1764_v49 = vpop.eup %1763 }
 0xf4b   :  { %v1117_v29 = vadd.f32 1.0, %v1764_v49  ;;  %v1301_v49 = vld [vmem:[%s2311_s5 + $0x28] sm:$0xff] }
 0xf4d   :  { %1765 = vrcp.f32 %v1117_v29 }
 0xf4e   :  { %1767 = vpow2.f32 %v1434_v32  ;;  %v1303_v32 = vld [vmem:[%s2311_s5 + $0x38] sm:$0xff] }
 0xf57   :  { %v1766_v30 = vpop.eup %1765 }
 0xf58   :  { %1126 = vrot.lane.b32.xlu0 %v1766_v30, %s1835_s19  ;;  %v1768_v33 = vpop.eup %1767 }
 0xf59   :  { %v1118_v56 = vadd.f32 1.0, %v1768_v33  ;;  %v1618_v33 = vpack.c.bf16 %v1303_v32, %v1302_v7 }
 0xf5b   :  { %1769 = vrcp.f32 %v1118_v56 }
 0xf5c   :  { %1771 = vtanh.f32 %v1108_v26  ;;  %v1612_v26 = vpack.c.bf16 %v1299_v40, %v1298_v35 }
 0xf5e   :  { %1613 = vmatpush3.bf16.msra.mxu1 %v1612_v26 }
 0xf5f   :  { %1614 = vmatprep.subr.bf16.mxu1 %v1838_v14 }
 0xf65   :  { %v1770_v41 = vpop.eup %1769 }
 0xf66   :  { %v1772_v43 = vpop.eup %1771 }
 0xf67   :  { %v1124_v45 = vsel %vm248_vm4, %v1772_v43, %v1770_v41 }
 0xf68   :  { %v1130_v52 = vmul.f32 %v1766_v30, %v1124_v45  ;;  %v1615_v30 = vpack.c.bf16 %v1301_v49, %v1300_v48 }
 0xf6a   :  { %1616 = vmatpush3.bf16.msra.mxu1 %v1615_v30 }
 0xf6b   :  { %1617 = vmatprep.subr.bf16.mxu1 %v1838_v14 }
 0xf6e   :  { %1619 = vmatpush3.bf16.msra.mxu1 %v1618_v33 }
 0xfca   :  { %v1127_v47 = vpop.permute.xlu0 %1126 }
 0xfcb   :  { %v1129_v16 = vmul.f32 %v1127_v47, %v1030_v46 }
 0xfcd   :  { %v1131_v55 = vadd.f32 %v1130_v52, %v1129_v16 }
 0xfcf   :  { %1773 = vtanh.f32 %v1131_v55 }
 0xfd9   :  { %v1774_v58 = vpop.eup %1773 }
 0xfda   :  { %1134 = vrot.lane.b32.xlu1 %v1774_v58, %s1835_s19 }
 0xfde   :  { %1149 = vrot.lane.b32.xlu1 %v1131_v55, %s1837_s20 }
0x104c   :  { %v1135_v59 = vpop.permute.xlu1 %1134 }
0x104d   :  { %v1137_v63 = vmul.f32 %v1135_v59, %v1124_v45 }
0x104f   :  { %v1278_v0 = vrot.slane %v1137_v63, 2  ;;  %1162 = vrot.lane.b32.xlu0 %v1137_v63, %s1835_s19 }
0x1050   :  { %v1150_v62 = vpop.permute.xlu1 %1149 }
0x1051   :  { %v2257_v1 = vsel %vm1292_vm11, %v2226_v24, %v1278_v0 }
0x1053   :  { %1152 = vrot.lane.b32.xlu0 %v1131_v55, %s1836_s4  ;;  %s1665_s4 = spop %1664 }
0x1054   :  { %s1147_s20 = smul.f32 %s1665_s4, %s1139_s22  ;;  %v1156_v50 = vstv %s1665_s4 }
0x1055   :  { %v1157_v20 = vmul.f32 %v1156_v50, %v1131_v55 }
0x1056   :  { %v1158_v8 = vstv %s1147_s20 }
0x10c1   :  { %v1163_v2 = vpop.permute.xlu0 %1162 }
0x10c2   :  { %1436 = vmatmul.mubr.msk.f32.vlgmr.msra.gmra.mrb[8].mxu0 %vm251_vm5, %v1163_v2 }
0x10c5   :  { %v1153_v61 = vpop.permute.xlu0 %1152 }
0x10c6   :  { %v1155_v15 = vsel %vm374_vm6, %v1150_v62, %v1153_v61 }
0x10c7   :  { %v1159_v17 = vmul.f32 %v1158_v8, %v1155_v15 }
0x10c9   :  { %v1160_v23 = vadd.f32 %v1159_v17, %v1157_v20 }
0x1195   :  { %v1232_v3 = vpop.f32.mrb[8].mxu0 }
0x1196   :  { %v1237_v4 = vadd.f32 %v1232_v3, %v222_v53  ;;  %v1234_v5 = vpop.f32.mrb[9].mxu0 }
0x1197   :  { %v1238_v6 = vadd.f32 %v1234_v5, %v224_v54 }
0x1198   :  { %v1437_v9 = vmul.f32 -1.442695, %v1237_v4 }
0x1199   :  { %v1438_v12 = vmul.f32 -1.442695, %v1238_v6 }
0x119a   :  { %1775 = vpow2.f32 %v1437_v9 }
0x11a4   :  { %v1776_v27 = vpop.eup %1775 }
0x11a5   :  { %v1247_v10 = vadd.f32 1.0, %v1776_v27 }
0x11a7   :  { %1777 = vrcp.f32 %v1247_v10 }
0x11a8   :  { %1779 = vpow2.f32 %v1438_v12 }
0x11b1   :  { %v1778_v11 = vpop.eup %1777 }
0x11b2   :  { %1256 = vrot.lane.b32.xlu1 %v1778_v11, %s1835_s19  ;;  %v1780_v13 = vpop.eup %1779 }
0x11b3   :  { %v1248_v60 = vadd.f32 1.0, %v1780_v13 }
0x11b5   :  { %1781 = vrcp.f32 %v1248_v60 }
0x11b6   :  { %1783 = vtanh.f32 %v1238_v6 }
0x11bf   :  { %v1782_v51 = vpop.eup %1781 }
0x11c0   :  { %v1784_v18 = vpop.eup %1783 }
0x11c1   :  { %v1254_v21 = vsel %vm248_vm4, %v1784_v18, %v1782_v51 }
0x11c2   :  { %v1260_v25 = vmul.f32 %v1778_v11, %v1254_v21 }
0x1224   :  { %v1257_v24 = vpop.permute.xlu1 %1256 }
0x1225   :  { %v1259_v19 = vmul.f32 %v1257_v24, %v1160_v23 }
0x1227   :  { %v1261_v22 = vadd.f32 %v1260_v25, %v1259_v19 }
0x1229   :  { %1785 = vtanh.f32 %v1261_v22 }
0x1233   :  { %v1786_v29 = vpop.eup %1785 }
0x1234   :  { %1264 = vrot.lane.b32.xlu0 %v1786_v29, %s1835_s19 }
0x12a6   :  { %v1265_v56 = vpop.permute.xlu0 %1264 }
0x12a7   :  { %v1267_v57 = vmul.f32 %v1265_v56, %v1254_v21 }
0x12a9   :  { %v1281_v34 = vrot.slane %v1267_v57, 1 }
0x12ab   :  { %v1295_v36 = vsel %vm1294_vm13, %v2257_v1, %v1281_v34 }
0x12ac   :  { %1312 = vrot.lane.b32.xlu1 %v1295_v36, %s1835_s19 }
0x131e   :  { %v1313_v37 = vpop.permute.xlu1 %1312 }
0x131f   :  { %1468 = vmatmul.mubr.msk.f32.vlgmr.msra.gmra.mrb[16].mxu1 %vm251_vm5, %v1313_v37 }
0x13f2   :  { %v1382_v41 = vpop.f32.mrb[16].mxu1 }
0x13f3   :  { %v1383_v42 = vadd.f32 %v1439_v39, %v1382_v41  ;;  %v1469_v43 = vpop.f32.mrb[17].mxu1 }
0x13f5   :  { %v1441_v44 = vmul.f32 -1.442695, %v1383_v42 }
0x13f7   :  { %1787 = vpow2.f32 %v1441_v44 }
0x1401   :  { %v1788_v45 = vpop.eup %1787 }
0x1402   :  { %v1389_v46 = vadd.f32 1.0, %v1788_v45 }
0x1404   :  { %1789 = vrcp.f32 %v1389_v46 }
0x140e   :  { %v1790_v47 = vpop.eup %1789 }
0x140f   :  { %1393 = vst.msk [vmem:[%s2313_s7] sm:$0xff] %vm1392_vm14, %v1790_v47 }
0x1410   :  { %1398 = vsyncpa [#allocation3], 1 }
0x1411   :  { %1399 = vsyncpa [#allocation4], 1 }

</bundles_post_ra>
